<compile_context>
chip_gen: v7x
topology: tpu7x:2x2x1
jax: 0.10.0
libtpu: 0.0.40
codegen_flags: <defaults>
</compile_context>

<pallas_src>
import functools

import jax
import jax.numpy as jnp
from jax import lax
from jax.experimental import pallas as pl
from jax.experimental.pallas import tpu as pltpu


# ---------------------------------------------------------------------------
# Kernel 1: grouped conv (+ bias): in-kernel im2col into a VMEM scratch, then one
# MXU dot per matmul-group (a single dot in the block-diagonal case).
# Grid: (N, num_hw_tiles).  Per grid point:
#   x_ref     : (Hp, Wp, C_in)               padded NHWC sample (resident across t)
#   w_ref     : (g_mm, k*k*cin_mm, cout_mm)  folded conv weight (resident)
#   b_ref     : (1, C_out)                   bias
#   y_ref     : (tile_hw, C_out)             conv output tile (spatial rows on sublanes)
#   stats_ref : (2, C_out)                   [sum; sum_sq] accumulated across hw tiles
#   patch_ref : (tile_hw, k*k*cin_mm)        VMEM scratch, im2col patch
# ---------------------------------------------------------------------------
def _conv_kernel(x_ref, w_ref, b_ref, y_ref, *rest, k, s, th, wout, act_norm):
    if act_norm:
        stats_ref, patch_ref = rest
    else:
        (patch_ref,) = rest

    t = pl.program_id(1)
    tile_hw, kkcin = patch_ref.shape
    cin_mm = kkcin // (k * k)
    g_mm = w_ref.shape[0]
    cout_mm = y_ref.shape[-1] // g_mm
    row0 = pl.multiple_of(t * (th * s), th * s)

    for g in range(g_mm):
        # -- im2col: k*k cheap shifted-window copies of the resident sample block ----
        for kh in range(k):
            for kw in range(k):
                if s == 1:
                    xs = x_ref[pl.ds(row0 + kh, th), pl.ds(kw, wout),
                               pl.ds(g * cin_mm, cin_mm)]
                else:
                    # TODO(synk): for s > 1, pre-split x into s*s polyphase planes
                    # host-side so every tap becomes a stride-1 slice (avoids k*k
                    # strided sublane gathers per tile).
                    xs = x_ref[pl.ds(row0 + kh, th, stride=s),
                               pl.ds(kw, wout, stride=s),
                               pl.ds(g * cin_mm, cin_mm)]
                tap = kh * k + kw
                patch_ref[:, tap * cin_mm:(tap + 1) * cin_mm] = (
                    xs.reshape(tile_hw, cin_mm))

        # -- single MXU dot with K = k*k*cin_mm, f32 accumulation ---------------------
        c0, c1 = g * cout_mm, (g + 1) * cout_mm
        yg = jnp.dot(patch_ref[...], w_ref[g],
                     preferred_element_type=jnp.float32)
        yg = yg + b_ref[:, c0:c1]
        y_ref[:, c0:c1] = yg.astype(y_ref.dtype)

        if act_norm:
            # Per-channel running sums for GroupNorm.  NOTE: variance is later formed
            # as E[x^2] - E[x]^2 from these f32 sums; for very large groups with large
            # means this can lose precision vs. a two-pass / Welford-style combine.
            ssum = jnp.sum(yg, axis=0, keepdims=True)
            ssq = jnp.sum(yg * yg, axis=0, keepdims=True)

            @pl.when(t == 0)
            def _(ssum=ssum, ssq=ssq, c0=c0, c1=c1):
                stats_ref[0:1, c0:c1] = ssum
                stats_ref[1:2, c0:c1] = ssq

            @pl.when(t != 0)
            def _(ssum=ssum, ssq=ssq, c0=c0, c1=c1):
                stats_ref[0:1, c0:c1] += ssum
                stats_ref[1:2, c0:c1] += ssq


# ---------------------------------------------------------------------------
# Kernel 2: per-(sample, channel) affine (GroupNorm folded into scale/shift) + LeakyReLU.
# ---------------------------------------------------------------------------
def _norm_act_kernel(y_ref, sc_ref, sh_ref, o_ref):
    z = y_ref[...].astype(jnp.float32) * sc_ref[...] + sh_ref[...]
    o_ref[...] = jnp.where(z >= 0, z, 0.2 * z).astype(o_ref.dtype)


# ---------------------------------------------------------------------------
# Host-side helpers.
# ---------------------------------------------------------------------------
def _pick_tile_rows(hout, wout, target_sublanes, tile_rows=None):
    """Output rows per HW tile: divides hout; tile_hw a multiple of 8 sublanes."""
    if tile_rows is None:
        tile_rows = max(1, target_sublanes // max(1, wout))
    th = max(1, min(int(tile_rows), hout))
    while th > 1 and (hout % th != 0 or (th * wout) % 8 != 0):
        th -= 1
    if (th * wout) % 8 != 0:          # fall back to full-HW block (== full dim)
        th = hout
    return th


def _vmem_capacity_bytes():
    try:
        return int(pltpu.get_tpu_info().vmem_capacity_bytes)
    except Exception:
        return 64 * 1024 * 1024        # conservative (v7x per-core)


def group_convolution(x, weight, bias, gamma, beta, *, kernel_size, stride,
                      padding, groups, act_norm, eps=1e-5,
                      compute_dtype=jnp.bfloat16, tile_rows=None,
                      out_layout="NCHW", out_dtype=None):
    """Forward pass of GroupConvolution.  x: (N, C_in, H, W) NCHW.

    out_layout="NHWC" and/or out_dtype=jnp.bfloat16 let downstream consumers skip the
    NCHW relayout / f32 up-cast HBM passes (defaults match the PyTorch module).
    """
    N, C_in, H, W = x.shape
    C_out = weight.shape[0]
    if C_in % groups != 0:                 # mirror the PyTorch module's fallback
        groups = 1
    if C_out % groups != 0:                # PyTorch Conv2d / GroupNorm would raise
        raise ValueError("output_channels must be divisible by groups")
    out_dtype = x.dtype if out_dtype is None else out_dtype

    k, s, p = kernel_size, stride, padding
    cin_g, cout_g = C_in // groups, C_out // groups
    Hout = (H + 2 * p - k) // s + 1
    Wout = (W + 2 * p - k) // s + 1
    HW = Hout * Wout

    th = _pick_tile_rows(Hout, Wout, 512, tile_rows)
    num_t = Hout // th
    tile_hw = th * Wout

    # --- ingest: NCHW -> padded NHWC, read ONCE by the kernel (no host im2col) -------
    x_nhwc = jnp.transpose(x, (0, 2, 3, 1))
    xp = jnp.pad(x_nhwc, ((0, 0), (p, p), (p, p), (0, 0))).astype(compute_dtype)
    Hp, Wp = H + 2 * p, W + 2 * p

    # --- weight folding ---------------------------------------------------------------
    # Block-diagonal (single dot, lane-dense C_out store) only when cout_g under-fills
    # the MXU N dim; otherwise per-group dots avoid the groups-x FLOP/VMEM blowup.
    use_block_diag = (groups == 1) or (cout_g < 128)
    wg = weight.reshape(groups, cout_g, cin_g, k, k)
    if use_block_diag:
        g_mm, cin_mm, cout_mm = 1, C_in, C_out
        wt = jnp.transpose(wg, (3, 4, 0, 2, 1))            # (kh, kw, g, cin_g, cout_g)
        eye = jnp.eye(groups, dtype=weight.dtype)
        w_mm = jnp.einsum("hwgic,gG->hwgiGc", wt, eye)      # block-diagonal over groups
        w_mm = w_mm.reshape(1, k * k * C_in, C_out).astype(compute_dtype)
    else:
        g_mm, cin_mm, cout_mm = groups, cin_g, cout_g
        wt = jnp.transpose(wg, (0, 3, 4, 2, 1))             # (g, kh, kw, cin_g, cout_g)
        w_mm = wt.reshape(groups, k * k * cin_g, cout_g).astype(compute_dtype)

    b2 = bias.reshape(1, C_out).astype(jnp.float32)
    y_dtype = compute_dtype if act_norm else out_dtype

    # --- VMEM budgeting / buffering -----------------------------------------------------
    isz = jnp.dtype(compute_dtype).itemsize
    x_blk = Hp * Wp * C_in * isz
    w_blk = g_mm * (k * k * cin_mm) * cout_mm * isz
    y_blk = tile_hw * C_out * jnp.dtype(y_dtype).itemsize
    patch_blk = tile_hw * max(k * k * cin_mm, 128) * isz
    cap = _vmem_capacity_bytes()
    usable = (cap * 3) // 4

    def footprint(x_bufs, w_bufs):
        return (x_bufs * x_blk + w_bufs * w_blk + 2 * y_blk
                + 2 * 2 * C_out * 4 + patch_blk + (4 << 20))

    # Weight/bias index maps are constant and x's depends only on n: single-buffer the
    # weight when its second copy is pure waste, and x when the double-buffered resident
    # sample would not fit the device's scoped-VMEM budget (v7x: 64 MiB physical).
    w_bufs = 1 if (w_blk > (1 << 20) or footprint(2, 2) > usable) else 2
    x_bufs = 1 if footprint(2, w_bufs) > usable else 2
    # TODO(synk): if footprint(1, 1) still exceeds `usable`, switch x to halo-tiled
    # manual DMA (memory_space=pl.ANY + make_async_copy) instead of a resident sample.
    vmem1 = int(min(max(footprint(x_bufs, w_bufs) + (8 << 20), 32 << 20),
                    max(usable, 32 << 20)))

    def _spec(shape, index_map, bufs):
        if bufs == 1:
            return pl.BlockSpec(shape, index_map, pipeline_mode=pl.Buffered(1))
        return pl.BlockSpec(shape, index_map)

    in_specs = [
        _spec((None, Hp, Wp, C_in), lambda n, t: (n, 0, 0, 0), x_bufs),   # per-sample
        _spec((g_mm, k * k * cin_mm, cout_mm), lambda n, t: (0, 0, 0), w_bufs),
        pl.BlockSpec((1, C_out), lambda n, t: (0, 0)),
    ]
    # TODO(synk): when C_out < 128 the y store is a masked vst; packing two hw tiles
    # (or two samples) along lanes would make it lane-dense.
    y_spec = pl.BlockSpec((None, tile_hw, C_out), lambda n, t: (n, t, 0))
    if act_norm:
        out_shape = (jax.ShapeDtypeStruct((N, HW, C_out), y_dtype),
                     jax.ShapeDtypeStruct((N, 2, C_out), jnp.float32))
        out_specs = (y_spec,
                     pl.BlockSpec((None, 2, C_out), lambda n, t: (n, 0, 0)))
        dims = ("parallel", "arbitrary")        # stats accumulate across hw tiles
    else:
        out_shape = jax.ShapeDtypeStruct((N, HW, C_out), y_dtype)
        out_specs = y_spec
        dims = ("parallel", "parallel")
    # TODO(synk): for N == 1 on v7x, split the hw-tile axis into a leading size-2
    # "parallel" axis with per-chunk stats slots so both TensorCores are used.

    conv_kernel = functools.partial(_conv_kernel, k=k, s=s, th=th, wout=Wout,
                                    act_norm=act_norm)
    conv_out = pl.pallas_call(
        conv_kernel,
        out_shape=out_shape,
        grid=(N, num_t),
        in_specs=in_specs,
        out_specs=out_specs,
        scratch_shapes=[pltpu.VMEM((tile_hw, k * k * cin_mm), compute_dtype)],
        compiler_params=pltpu.CompilerParams(
            dimension_semantics=dims, vmem_limit_bytes=vmem1),
    )(xp, w_mm, b2)

    if act_norm:
        y_pre, stats = conv_out
        # Tiny (N, 2, C_out) stats -> per-(sample, group) mean / inv-std, folded with
        # gamma/beta into a per-(sample, channel) scale & shift for kernel 2.
        # NOTE: stats were accumulated from the f32 conv output while kernel 2
        # normalizes the bf16-rounded y_pre -> a small systematic mismatch vs. an
        # end-to-end f32 reference (covered by the loosened tolerance below).
        cnt = float(HW * cout_g)
        s1 = stats[:, 0, :].reshape(N, groups, cout_g).sum(-1)
        s2 = stats[:, 1, :].reshape(N, groups, cout_g).sum(-1)
        mean = s1 / cnt
        var = jnp.maximum(s2 / cnt - mean * mean, 0.0)
        inv = lax.rsqrt(var + eps)
        mean_c = jnp.repeat(mean, cout_g, axis=1)                   # (N, C_out)
        inv_c = jnp.repeat(inv, cout_g, axis=1)
        scale_c = (gamma[None, :] * inv_c).astype(jnp.float32)
        shift_c = (beta[None, :] - mean_c * scale_c).astype(jnp.float32)
        scale_c = scale_c.reshape(N, 1, C_out)
        shift_c = shift_c.reshape(N, 1, C_out)

        # Elementwise pass is purely HBM-bound: give it its own, larger spatial tile.
        th2 = _pick_tile_rows(Hout, Wout, 2048)
        num_t2 = Hout // th2
        tile_hw2 = th2 * Wout
        vmem2 = int(min(max(2 * tile_hw2 * C_out *
                            (isz + jnp.dtype(out_dtype).itemsize)
                            + 16 * C_out + (4 << 20), 32 << 20),
                        max(usable, 32 << 20)))

        y = pl.pallas_call(
            _norm_act_kernel,
            out_shape=jax.ShapeDtypeStruct((N, HW, C_out), out_dtype),
            grid=(N, num_t2),
            in_specs=[
                pl.BlockSpec((None, tile_hw2, C_out), lambda n, t: (n, t, 0)),
                pl.BlockSpec((None, 1, C_out), lambda n, t: (n, 0, 0)),
                pl.BlockSpec((None, 1, C_out), lambda n, t: (n, 0, 0)),
            ],
            out_specs=pl.BlockSpec((None, tile_hw2, C_out), lambda n, t: (n, t, 0)),
            compiler_params=pltpu.CompilerParams(
                dimension_semantics=("parallel", "parallel"),
                vmem_limit_bytes=vmem2),
        )(y_pre, scale_c, shift_c)
    else:
        y = conv_out

    # (N, HW, C_out) -> requested layout.  NCHW (PyTorch-compatible) costs one extra
    # XLA relayout pass; pass out_layout="NHWC" to skip it.
    y = y.reshape(N, Hout, Wout, C_out)
    if out_layout.upper() == "NCHW":
        y = jnp.transpose(y, (0, 3, 1, 2))
    return y


# ---------------------------------------------------------------------------
# Pure-JAX reference (mirrors the PyTorch module) for correctness checking.
# ---------------------------------------------------------------------------
def reference(x, weight, bias, gamma, beta, *, kernel_size, stride, padding,
              groups, act_norm, eps=1e-5):
    if x.shape[1] % groups != 0:
        groups = 1
    y = lax.conv_general_dilated(
        x, weight, window_strides=(stride, stride),
        padding=[(padding, padding), (padding, padding)],
        dimension_numbers=("NCHW", "OIHW", "NCHW"),
        feature_group_count=groups)
    y = y + bias[None, :, None, None]
    if act_norm:
        N, C, Hh, Ww = y.shape
        yg = y.reshape(N, groups, -1)
        mean = jnp.mean(yg, axis=-1, keepdims=True)
        var = jnp.mean((yg - mean) ** 2, axis=-1, keepdims=True)
        yg = (yg - mean) / jnp.sqrt(var + eps)
        y = yg.reshape(N, C, Hh, Ww)
        y = y * gamma[None, :, None, None] + beta[None, :, None, None]
        y = jnp.where(y >= 0, y, 0.2 * y)
    return y


if __name__ == "__main__":
    # Small, deterministic configuration consistent with the module's forward.
    N, C_in, H, W = 2, 4, 16, 16
    C_out, k, s, p, groups = 8, 3, 1, 1, 2
    act_norm = True

    key = jax.random.PRNGKey(0)
    kx, kw, kb = jax.random.split(key, 3)
    x = jax.random.normal(kx, (N, C_in, H, W), dtype=jnp.float32)
    weight = 0.1 * jax.random.normal(kw, (C_out, C_in // groups, k, k), dtype=jnp.float32)
    bias = 0.05 * jax.random.normal(kb, (C_out,), dtype=jnp.float32)
    gamma = jnp.ones((C_out,), dtype=jnp.float32)    # GroupNorm default init
    beta = jnp.zeros((C_out,), dtype=jnp.float32)

    # tile_rows=4 -> 4 spatial tiles per sample: exercises the in-kernel im2col, the
    # resident x block, cross-tile stats accumulation and the normalize kernel.
    fwd = jax.jit(lambda a, w_, b_, g_, be_: group_convolution(
        a, w_, b_, g_, be_, kernel_size=k, stride=s, padding=p, groups=groups,
        act_norm=act_norm, compute_dtype=jnp.bfloat16, tile_rows=4))

    out = jax.block_until_ready(fwd(x, weight, bias, gamma, beta))

    ref = reference(x, weight, bias, gamma, beta, kernel_size=k, stride=s,
                    padding=p, groups=groups, act_norm=act_norm)
    assert out.shape == (N, C_out, H, W)
    max_err = float(jnp.max(jnp.abs(out - ref)))
    # bf16 matmul inputs (f32 accumulation) -> loosened tolerance vs the f32 reference.
    assert bool(jnp.allclose(out, ref, atol=3e-2, rtol=5e-2)), f"max err {max_err}"

    print("KERNEL_OK")
</pallas_src>

<mosaic_0001>
module attributes {stable_mosaic.version = 11 : i64} {
  func.func @_conv_kernel(%arg0: i32, %arg1: i32, %arg2: memref<1x18x18x4xbf16, #tpu.memory_space<vmem>>, %arg3: memref<1x36x8xbf16, #tpu.memory_space<vmem>>, %arg4: memref<1x8xf32, #tpu.memory_space<vmem>>, %arg5: memref<1x64x8xbf16, #tpu.memory_space<vmem>>, %arg6: memref<1x2x8xf32, #tpu.memory_space<vmem>>, %arg7: memref<64x36xbf16, #tpu.memory_space<vmem>>) attributes {dimension_semantics = [#tpu.dimension_semantics<parallel>, #tpu.dimension_semantics<arbitrary>], iteration_bounds = array<i64: 2, 4>, scalar_prefetch = 0 : i64, scratch_operands = 1 : i64, tpu.core_type = #tpu.core_type<tc>, window_params = [{transform_indices = @transform_0, window_bounds = array<i64: 1, 18, 18, 4>}, {pipeline_mode = #tpu.pipeline_mode<synchronous>, transform_indices = @transform_1, window_bounds = array<i64: 1, 36, 8>}, {pipeline_mode = #tpu.pipeline_mode<synchronous>, transform_indices = @transform_2, window_bounds = array<i64: 1, 8>}, {transform_indices = @transform_3, window_bounds = array<i64: 1, 64, 8>}, {transform_indices = @transform_4, window_bounds = array<i64: 1, 2, 8>}]} {
    %c4_i32 = arith.constant 4 : i32
    %0 = arith.muli %arg1, %c4_i32 : i32
    %1 = tpu.assume_multiple %0, 4 : i32
    %c0_i32 = arith.constant 0 : i32
    %2 = arith.addi %1, %c0_i32 : i32
    %c0 = arith.constant 0 : index
    %3 = arith.index_cast %2 : i32 to index
    %c0_0 = arith.constant 0 : index
    %c0_1 = arith.constant 0 : index
    %4 = vector.load %arg2[%c0, %3, %c0_0, %c0_1] : memref<1x18x18x4xbf16, #tpu.memory_space<vmem>>, vector<1x4x16x4xbf16>
    %5 = vector.shape_cast %4 : vector<1x4x16x4xbf16> to vector<4x16x4xbf16>
    %6 = vector.shape_cast %5 : vector<4x16x4xbf16> to vector<64x4xbf16>
    %c0_2 = arith.constant 0 : index
    %c0_3 = arith.constant 0 : index
    %7 = vector.load %arg7[%c0_2, %c0_3] : memref<64x36xbf16, #tpu.memory_space<vmem>>, vector<64x4xbf16>
    tpu.vector_store %arg7[%c0_2, %c0_3], %6 {strides = array<i32>} : memref<64x36xbf16, #tpu.memory_space<vmem>>, vector<64x4xbf16>,
    %c0_i32_4 = arith.constant 0 : i32
    %8 = arith.addi %1, %c0_i32_4 : i32
    %c0_5 = arith.constant 0 : index
    %9 = arith.index_cast %8 : i32 to index
    %c1 = arith.constant 1 : index
    %c0_6 = arith.constant 0 : index
    %10 = vector.load %arg2[%c0_5, %9, %c1, %c0_6] : memref<1x18x18x4xbf16, #tpu.memory_space<vmem>>, vector<1x4x16x4xbf16>
    %11 = vector.shape_cast %10 : vector<1x4x16x4xbf16> to vector<4x16x4xbf16>
    %12 = vector.shape_cast %11 : vector<4x16x4xbf16> to vector<64x4xbf16>
    %c0_7 = arith.constant 0 : index
    %c4 = arith.constant 4 : index
    %13 = vector.load %arg7[%c0_7, %c4] : memref<64x36xbf16, #tpu.memory_space<vmem>>, vector<64x4xbf16>
    tpu.vector_store %arg7[%c0_7, %c4], %12 {strides = array<i32>} : memref<64x36xbf16, #tpu.memory_space<vmem>>, vector<64x4xbf16>,
    %c0_i32_8 = arith.constant 0 : i32
    %14 = arith.addi %1, %c0_i32_8 : i32
    %c0_9 = arith.constant 0 : index
    %15 = arith.index_cast %14 : i32 to index
    %c2 = arith.constant 2 : index
    %c0_10 = arith.constant 0 : index
    %16 = vector.load %arg2[%c0_9, %15, %c2, %c0_10] : memref<1x18x18x4xbf16, #tpu.memory_space<vmem>>, vector<1x4x16x4xbf16>
    %17 = vector.shape_cast %16 : vector<1x4x16x4xbf16> to vector<4x16x4xbf16>
    %18 = vector.shape_cast %17 : vector<4x16x4xbf16> to vector<64x4xbf16>
    %c0_11 = arith.constant 0 : index
    %c8 = arith.constant 8 : index
    %19 = vector.load %arg7[%c0_11, %c8] : memref<64x36xbf16, #tpu.memory_space<vmem>>, vector<64x4xbf16>
    tpu.vector_store %arg7[%c0_11, %c8], %18 {strides = array<i32>} : memref<64x36xbf16, #tpu.memory_space<vmem>>, vector<64x4xbf16>,
    %c1_i32 = arith.constant 1 : i32
    %20 = arith.addi %1, %c1_i32 : i32
    %c0_12 = arith.constant 0 : index
    %21 = arith.index_cast %20 : i32 to index
    %c0_13 = arith.constant 0 : index
    %c0_14 = arith.constant 0 : index
    %22 = vector.load %arg2[%c0_12, %21, %c0_13, %c0_14] : memref<1x18x18x4xbf16, #tpu.memory_space<vmem>>, vector<1x4x16x4xbf16>
    %23 = vector.shape_cast %22 : vector<1x4x16x4xbf16> to vector<4x16x4xbf16>
    %24 = vector.shape_cast %23 : vector<4x16x4xbf16> to vector<64x4xbf16>
    %c0_15 = arith.constant 0 : index
    %c12 = arith.constant 12 : index
    %25 = vector.load %arg7[%c0_15, %c12] : memref<64x36xbf16, #tpu.memory_space<vmem>>, vector<64x4xbf16>
    tpu.vector_store %arg7[%c0_15, %c12], %24 {strides = array<i32>} : memref<64x36xbf16, #tpu.memory_space<vmem>>, vector<64x4xbf16>,
    %c1_i32_16 = arith.constant 1 : i32
    %26 = arith.addi %1, %c1_i32_16 : i32
    %c0_17 = arith.constant 0 : index
    %27 = arith.index_cast %26 : i32 to index
    %c1_18 = arith.constant 1 : index
    %c0_19 = arith.constant 0 : index
    %28 = vector.load %arg2[%c0_17, %27, %c1_18, %c0_19] : memref<1x18x18x4xbf16, #tpu.memory_space<vmem>>, vector<1x4x16x4xbf16>
    %29 = vector.shape_cast %28 : vector<1x4x16x4xbf16> to vector<4x16x4xbf16>
    %30 = vector.shape_cast %29 : vector<4x16x4xbf16> to vector<64x4xbf16>
    %c0_20 = arith.constant 0 : index
    %c16 = arith.constant 16 : index
    %31 = vector.load %arg7[%c0_20, %c16] : memref<64x36xbf16, #tpu.memory_space<vmem>>, vector<64x4xbf16>
    tpu.vector_store %arg7[%c0_20, %c16], %30 {strides = array<i32>} : memref<64x36xbf16, #tpu.memory_space<vmem>>, vector<64x4xbf16>,
    %c1_i32_21 = arith.constant 1 : i32
    %32 = arith.addi %1, %c1_i32_21 : i32
    %c0_22 = arith.constant 0 : index
    %33 = arith.index_cast %32 : i32 to index
    %c2_23 = arith.constant 2 : index
    %c0_24 = arith.constant 0 : index
    %34 = vector.load %arg2[%c0_22, %33, %c2_23, %c0_24] : memref<1x18x18x4xbf16, #tpu.memory_space<vmem>>, vector<1x4x16x4xbf16>
    %35 = vector.shape_cast %34 : vector<1x4x16x4xbf16> to vector<4x16x4xbf16>
    %36 = vector.shape_cast %35 : vector<4x16x4xbf16> to vector<64x4xbf16>
    %c0_25 = arith.constant 0 : index
    %c20 = arith.constant 20 : index
    %37 = vector.load %arg7[%c0_25, %c20] : memref<64x36xbf16, #tpu.memory_space<vmem>>, vector<64x4xbf16>
    tpu.vector_store %arg7[%c0_25, %c20], %36 {strides = array<i32>} : memref<64x36xbf16, #tpu.memory_space<vmem>>, vector<64x4xbf16>,
    %c2_i32 = arith.constant 2 : i32
    %38 = arith.addi %1, %c2_i32 : i32
    %c0_26 = arith.constant 0 : index
    %39 = arith.index_cast %38 : i32 to index
    %c0_27 = arith.constant 0 : index
    %c0_28 = arith.constant 0 : index
    %40 = vector.load %arg2[%c0_26, %39, %c0_27, %c0_28] : memref<1x18x18x4xbf16, #tpu.memory_space<vmem>>, vector<1x4x16x4xbf16>
    %41 = vector.shape_cast %40 : vector<1x4x16x4xbf16> to vector<4x16x4xbf16>
    %42 = vector.shape_cast %41 : vector<4x16x4xbf16> to vector<64x4xbf16>
    %c0_29 = arith.constant 0 : index
    %c24 = arith.constant 24 : index
    %43 = vector.load %arg7[%c0_29, %c24] : memref<64x36xbf16, #tpu.memory_space<vmem>>, vector<64x4xbf16>
    tpu.vector_store %arg7[%c0_29, %c24], %42 {strides = array<i32>} : memref<64x36xbf16, #tpu.memory_space<vmem>>, vector<64x4xbf16>,
    %c2_i32_30 = arith.constant 2 : i32
    %44 = arith.addi %1, %c2_i32_30 : i32
    %c0_31 = arith.constant 0 : index
    %45 = arith.index_cast %44 : i32 to index
    %c1_32 = arith.constant 1 : index
    %c0_33 = arith.constant 0 : index
    %46 = vector.load %arg2[%c0_31, %45, %c1_32, %c0_33] : memref<1x18x18x4xbf16, #tpu.memory_space<vmem>>, vector<1x4x16x4xbf16>
    %47 = vector.shape_cast %46 : vector<1x4x16x4xbf16> to vector<4x16x4xbf16>
    %48 = vector.shape_cast %47 : vector<4x16x4xbf16> to vector<64x4xbf16>
    %c0_34 = arith.constant 0 : index
    %c28 = arith.constant 28 : index
    %49 = vector.load %arg7[%c0_34, %c28] : memref<64x36xbf16, #tpu.memory_space<vmem>>, vector<64x4xbf16>
    tpu.vector_store %arg7[%c0_34, %c28], %48 {strides = array<i32>} : memref<64x36xbf16, #tpu.memory_space<vmem>>, vector<64x4xbf16>,
    %c2_i32_35 = arith.constant 2 : i32
    %50 = arith.addi %1, %c2_i32_35 : i32
    %c0_36 = arith.constant 0 : index
    %51 = arith.index_cast %50 : i32 to index
    %c2_37 = arith.constant 2 : index
    %c0_38 = arith.constant 0 : index
    %52 = vector.load %arg2[%c0_36, %51, %c2_37, %c0_38] : memref<1x18x18x4xbf16, #tpu.memory_space<vmem>>, vector<1x4x16x4xbf16>
    %53 = vector.shape_cast %52 : vector<1x4x16x4xbf16> to vector<4x16x4xbf16>
    %54 = vector.shape_cast %53 : vector<4x16x4xbf16> to vector<64x4xbf16>
    %c0_39 = arith.constant 0 : index
    %c32 = arith.constant 32 : index
    %55 = vector.load %arg7[%c0_39, %c32] : memref<64x36xbf16, #tpu.memory_space<vmem>>, vector<64x4xbf16>
    tpu.vector_store %arg7[%c0_39, %c32], %54 {strides = array<i32>} : memref<64x36xbf16, #tpu.memory_space<vmem>>, vector<64x4xbf16>,
    %c0_40 = arith.constant 0 : index
    %c0_41 = arith.constant 0 : index
    %56 = vector.load %arg7[%c0_40, %c0_41] : memref<64x36xbf16, #tpu.memory_space<vmem>>, vector<64x36xbf16>
    %c0_42 = arith.constant 0 : index
    %c0_43 = arith.constant 0 : index
    %c0_44 = arith.constant 0 : index
    %57 = vector.load %arg3[%c0_42, %c0_43, %c0_44] : memref<1x36x8xbf16, #tpu.memory_space<vmem>>, vector<1x36x8xbf16>
    %58 = vector.shape_cast %57 : vector<1x36x8xbf16> to vector<36x8xbf16>
    %cst = arith.constant dense<0.000000e+00> : vector<64x8xf32>
    %59 = tpu.matmul %56, %58, %cst {dimension_numbers = #tpu.dot_dimension_numbers<[1], [0], [0], [1], [0, 0, 1, 1], [], []>} : vector<64x36xbf16>, vector<36x8xbf16>, vector<64x8xf32> -> vector<64x8xf32>
    %c0_45 = arith.constant 0 : index
    %c0_46 = arith.constant 0 : index
    %60 = vector.load %arg4[%c0_45, %c0_46] : memref<1x8xf32, #tpu.memory_space<vmem>>, vector<1x8xf32>
    %61 = vector.broadcast %60 : vector<1x8xf32> to vector<64x8xf32>
    %62 = arith.addf %59, %61 : vector<64x8xf32>
    %63 = arith.truncf %62 : vector<64x8xf32> to vector<64x8xbf16>
    %c0_47 = arith.constant 0 : index
    %c0_48 = arith.constant 0 : index
    %c0_49 = arith.constant 0 : index
    %64 = vector.load %arg5[%c0_47, %c0_48, %c0_49] : memref<1x64x8xbf16, #tpu.memory_space<vmem>>, vector<1x64x8xbf16>
    %65 = vector.shape_cast %64 : vector<1x64x8xbf16> to vector<64x8xbf16>
    %66 = vector.shape_cast %63 : vector<64x8xbf16> to vector<1x64x8xbf16>
    tpu.vector_store %arg5[%c0_47, %c0_48, %c0_49], %66 {strides = array<i32>} : memref<1x64x8xbf16, #tpu.memory_space<vmem>>, vector<1x64x8xbf16>,
    %cst_50 = arith.constant dense<0.000000e+00> : vector<8xf32>
    %67 = vector.multi_reduction <add>, %62, %cst_50 [0] : vector<64x8xf32> to vector<8xf32>
    %68 = vector.shape_cast %67 : vector<8xf32> to vector<1x8xf32>
    %69 = arith.mulf %62, %62 : vector<64x8xf32>
    %cst_51 = arith.constant dense<0.000000e+00> : vector<8xf32>
    %70 = vector.multi_reduction <add>, %69, %cst_51 [0] : vector<64x8xf32> to vector<8xf32>
    %71 = vector.shape_cast %70 : vector<8xf32> to vector<1x8xf32>
    %c0_i32_52 = arith.constant 0 : i32
    %72 = arith.cmpi eq, %arg1, %c0_i32_52 : i32
    %73 = arith.extui %72 : i1 to i32
    %c0_i32_53 = arith.constant 0 : i32
    %74 = arith.cmpi ne, %73, %c0_i32_53 : i32
    scf.if %74 {
      %c0_56 = arith.constant 0 : index
      %c0_57 = arith.constant 0 : index
      %c0_58 = arith.constant 0 : index
      %78 = vector.load %arg6[%c0_56, %c0_57, %c0_58] : memref<1x2x8xf32, #tpu.memory_space<vmem>>, vector<1x1x8xf32>
      %79 = vector.shape_cast %78 : vector<1x1x8xf32> to vector<1x8xf32>
      %80 = vector.shape_cast %68 : vector<1x8xf32> to vector<1x1x8xf32>
      tpu.vector_store %arg6[%c0_56, %c0_57, %c0_58], %80 {strides = array<i32>} : memref<1x2x8xf32, #tpu.memory_space<vmem>>, vector<1x1x8xf32>,
      %c0_59 = arith.constant 0 : index
      %c1_60 = arith.constant 1 : index
      %c0_61 = arith.constant 0 : index
      %81 = vector.load %arg6[%c0_59, %c1_60, %c0_61] : memref<1x2x8xf32, #tpu.memory_space<vmem>>, vector<1x1x8xf32>
      %82 = vector.shape_cast %81 : vector<1x1x8xf32> to vector<1x8xf32>
      %83 = vector.shape_cast %71 : vector<1x8xf32> to vector<1x1x8xf32>
      tpu.vector_store %arg6[%c0_59, %c1_60, %c0_61], %83 {strides = array<i32>} : memref<1x2x8xf32, #tpu.memory_space<vmem>>, vector<1x1x8xf32>,
    } else {
    }
    %c0_i32_54 = arith.constant 0 : i32
    %75 = arith.cmpi ne, %arg1, %c0_i32_54 : i32
    %76 = arith.extui %75 : i1 to i32
    %c0_i32_55 = arith.constant 0 : i32
    %77 = arith.cmpi ne, %76, %c0_i32_55 : i32
    scf.if %77 {
      %c0_56 = arith.constant 0 : index
      %c0_57 = arith.constant 0 : index
      %c0_58 = arith.constant 0 : index
      %78 = vector.load %arg6[%c0_56, %c0_57, %c0_58] : memref<1x2x8xf32, #tpu.memory_space<vmem>>, vector<1x1x8xf32>
      %79 = vector.shape_cast %78 : vector<1x1x8xf32> to vector<1x8xf32>
      %80 = arith.addf %79, %68 : vector<1x8xf32>
      %c0_59 = arith.constant 0 : index
      %c0_60 = arith.constant 0 : index
      %c0_61 = arith.constant 0 : index
      %81 = vector.load %arg6[%c0_59, %c0_60, %c0_61] : memref<1x2x8xf32, #tpu.memory_space<vmem>>, vector<1x1x8xf32>
      %82 = vector.shape_cast %81 : vector<1x1x8xf32> to vector<1x8xf32>
      %83 = vector.shape_cast %80 : vector<1x8xf32> to vector<1x1x8xf32>
      tpu.vector_store %arg6[%c0_59, %c0_60, %c0_61], %83 {strides = array<i32>} : memref<1x2x8xf32, #tpu.memory_space<vmem>>, vector<1x1x8xf32>,
      %c0_62 = arith.constant 0 : index
      %c1_63 = arith.constant 1 : index
      %c0_64 = arith.constant 0 : index
      %84 = vector.load %arg6[%c0_62, %c1_63, %c0_64] : memref<1x2x8xf32, #tpu.memory_space<vmem>>, vector<1x1x8xf32>
      %85 = vector.shape_cast %84 : vector<1x1x8xf32> to vector<1x8xf32>
      %86 = arith.addf %85, %71 : vector<1x8xf32>
      %c0_65 = arith.constant 0 : index
      %c1_66 = arith.constant 1 : index
      %c0_67 = arith.constant 0 : index
      %87 = vector.load %arg6[%c0_65, %c1_66, %c0_67] : memref<1x2x8xf32, #tpu.memory_space<vmem>>, vector<1x1x8xf32>
      %88 = vector.shape_cast %87 : vector<1x1x8xf32> to vector<1x8xf32>
      %89 = vector.shape_cast %86 : vector<1x8xf32> to vector<1x1x8xf32>
      tpu.vector_store %arg6[%c0_65, %c1_66, %c0_67], %89 {strides = array<i32>} : memref<1x2x8xf32, #tpu.memory_space<vmem>>, vector<1x1x8xf32>,
    } else {
    }
    return
  }
  func.func @transform_0(%arg0: i32, %arg1: i32) -> (i32, i32, i32, i32) {
    %c0_i32 = arith.constant 0 : i32
    %c0_i32_0 = arith.constant 0 : i32
    %c0_i32_1 = arith.constant 0 : i32
    %c0_i32_2 = arith.constant 0 : i32
    return %arg0, %c0_i32, %c0_i32_0, %c0_i32_1 : i32, i32, i32, i32
  }
  func.func @transform_1(%arg0: i32, %arg1: i32) -> (i32, i32, i32) {
    %c0_i32 = arith.constant 0 : i32
    %c0_i32_0 = arith.constant 0 : i32
    %c0_i32_1 = arith.constant 0 : i32
    %c0_i32_2 = arith.constant 0 : i32
    return %c0_i32, %c0_i32_0, %c0_i32_1 : i32, i32, i32
  }
  func.func @transform_2(%arg0: i32, %arg1: i32) -> (i32, i32) {
    %c0_i32 = arith.constant 0 : i32
    %c0_i32_0 = arith.constant 0 : i32
    %c0_i32_1 = arith.constant 0 : i32
    return %c0_i32, %c0_i32_0 : i32, i32
  }
  func.func @transform_3(%arg0: i32, %arg1: i32) -> (i32, i32, i32) {
    %c0_i32 = arith.constant 0 : i32
    %c0_i32_0 = arith.constant 0 : i32
    return %arg0, %arg1, %c0_i32 : i32, i32, i32
  }
  func.func @transform_4(%arg0: i32, %arg1: i32) -> (i32, i32, i32) {
    %c0_i32 = arith.constant 0 : i32
    %c0_i32_0 = arith.constant 0 : i32
    %c0_i32_1 = arith.constant 0 : i32
    return %arg0, %c0_i32, %c0_i32_0 : i32, i32, i32
  }
}

module attributes {stable_mosaic.version = 11 : i64} {
  func.func @_norm_act_kernel(%arg0: i32, %arg1: i32, %arg2: memref<1x256x8xbf16, #tpu.memory_space<vmem>>, %arg3: memref<1x1x8xf32, #tpu.memory_space<vmem>>, %arg4: memref<1x1x8xf32, #tpu.memory_space<vmem>>, %arg5: memref<1x256x8xf32, #tpu.memory_space<vmem>>) attributes {dimension_semantics = [#tpu.dimension_semantics<parallel>, #tpu.dimension_semantics<parallel>], iteration_bounds = array<i64: 2, 1>, scalar_prefetch = 0 : i64, scratch_operands = 0 : i64, tpu.core_type = #tpu.core_type<tc>, window_params = [{transform_indices = @transform_0, window_bounds = array<i64: 1, 256, 8>}, {transform_indices = @transform_1, window_bounds = array<i64: 1, 1, 8>}, {transform_indices = @transform_2, window_bounds = array<i64: 1, 1, 8>}, {transform_indices = @transform_3, window_bounds = array<i64: 1, 256, 8>}]} {
    %c0 = arith.constant 0 : index
    %c0_0 = arith.constant 0 : index
    %c0_1 = arith.constant 0 : index
    %0 = vector.load %arg2[%c0, %c0_0, %c0_1] : memref<1x256x8xbf16, #tpu.memory_space<vmem>>, vector<1x256x8xbf16>
    %1 = vector.shape_cast %0 : vector<1x256x8xbf16> to vector<256x8xbf16>
    %2 = arith.extf %1 : vector<256x8xbf16> to vector<256x8xf32>
    %c0_2 = arith.constant 0 : index
    %c0_3 = arith.constant 0 : index
    %c0_4 = arith.constant 0 : index
    %3 = vector.load %arg3[%c0_2, %c0_3, %c0_4] : memref<1x1x8xf32, #tpu.memory_space<vmem>>, vector<1x1x8xf32>
    %4 = vector.shape_cast %3 : vector<1x1x8xf32> to vector<1x8xf32>
    %5 = vector.broadcast %4 : vector<1x8xf32> to vector<256x8xf32>
    %6 = arith.mulf %2, %5 : vector<256x8xf32>
    %c0_5 = arith.constant 0 : index
    %c0_6 = arith.constant 0 : index
    %c0_7 = arith.constant 0 : index
    %7 = vector.load %arg4[%c0_5, %c0_6, %c0_7] : memref<1x1x8xf32, #tpu.memory_space<vmem>>, vector<1x1x8xf32>
    %8 = vector.shape_cast %7 : vector<1x1x8xf32> to vector<1x8xf32>
    %9 = vector.broadcast %8 : vector<1x8xf32> to vector<256x8xf32>
    %10 = arith.addf %6, %9 : vector<256x8xf32>
    %cst = arith.constant 0.000000e+00 : f32
    %11 = vector.broadcast %cst : f32 to vector<256x8xf32>
    %12 = arith.cmpf oge, %10, %11 : vector<256x8xf32>
    %cst_8 = arith.constant 2.000000e-01 : f32
    %13 = vector.broadcast %cst_8 : f32 to vector<256x8xf32>
    %14 = arith.mulf %13, %10 : vector<256x8xf32>
    %15 = arith.select %12, %10, %14 : vector<256x8xi1>, vector<256x8xf32>
    %c0_9 = arith.constant 0 : index
    %c0_10 = arith.constant 0 : index
    %c0_11 = arith.constant 0 : index
    %16 = vector.load %arg5[%c0_9, %c0_10, %c0_11] : memref<1x256x8xf32, #tpu.memory_space<vmem>>, vector<1x256x8xf32>
    %17 = vector.shape_cast %16 : vector<1x256x8xf32> to vector<256x8xf32>
    %18 = vector.shape_cast %15 : vector<256x8xf32> to vector<1x256x8xf32>
    tpu.vector_store %arg5[%c0_9, %c0_10, %c0_11], %18 {strides = array<i32>} : memref<1x256x8xf32, #tpu.memory_space<vmem>>, vector<1x256x8xf32>,
    return
  }
  func.func @transform_0(%arg0: i32, %arg1: i32) -> (i32, i32, i32) {
    %c0_i32 = arith.constant 0 : i32
    %c0_i32_0 = arith.constant 0 : i32
    return %arg0, %arg1, %c0_i32 : i32, i32, i32
  }
  func.func @transform_1(%arg0: i32, %arg1: i32) -> (i32, i32, i32) {
    %c0_i32 = arith.constant 0 : i32
    %c0_i32_0 = arith.constant 0 : i32
    %c0_i32_1 = arith.constant 0 : i32
    return %arg0, %c0_i32, %c0_i32_0 : i32, i32, i32
  }
  func.func @transform_2(%arg0: i32, %arg1: i32) -> (i32, i32, i32) {
    %c0_i32 = arith.constant 0 : i32
    %c0_i32_0 = arith.constant 0 : i32
    %c0_i32_1 = arith.constant 0 : i32
    return %arg0, %c0_i32, %c0_i32_0 : i32, i32, i32
  }
  func.func @transform_3(%arg0: i32, %arg1: i32) -> (i32, i32, i32) {
    %c0_i32 = arith.constant 0 : i32
    %c0_i32_0 = arith.constant 0 : i32
    return %arg0, %arg1, %c0_i32 : i32, i32, i32
  }
}

</mosaic_0001>

<bundles_post_ra>
// kernel: squeeze.2
= control target key start
LH: loop header
LB: loop body
LE: loop exit
PB: predicated region body
PF: predicated region fallthrough
CT: control target
= control target key end

     0   :  { %vm7_vm0 = vcmask 31744   ;;  %s48_s0 = inlined_call_operand.vmem [shape: f32[2,8], index: 0, kind: input, shape index: {}]   ;;  %s49_s1 = inlined_call_operand.vmem [shape: f32[2,2,4], index: 1, kind: output, shape index: {}]  }
   0x1   :  { %v4_v0 = vld [vmem:[%s48_s0] sm:$0x3]  ;;  %s28_s0 = smov 124  }
   0x2   :  { %5 = vst [vmem:[#allocation1] sm:$0x3] %v4_v0 }
   0x9   :  { %v9_v1 = vld [vmem:[#allocation1] sm:$0x3]  }
   0xa   :  { %v6_v2 = vld [vmem:[#allocation1] sm:$0x3]   ;;  %10 = vrot.lane.b32.xlu0 %v9_v1, %s28_s0 }
   0xb   :  { %8 = vst.msk [vmem:[#allocation0] ss:$8 sm:$0x3] %vm7_vm0, %v6_v2  }
  0x7c   :  { %v11_v3 = vpop.permute.xlu0 %10  }
  0x7d   :  { %14 = vst.msk [vmem:[#allocation0 + $0x1] ss:$8 sm:$0x3] %vm7_vm0, %v11_v3  }
  0x84   :  { %v18_v4 = vld [vmem:[#allocation0] sm:$0x3]  ;;  %v22_v5 = vld [vmem:[#allocation0 + $0x8] sm:$0x3] }
  0x85   :  { %20 = vst [vmem:[%s49_s1] sm:$0x3] %v18_v4  ;;  %26 = vst [vmem:[%s49_s1 + $0x2] sm:$0x3] %v22_v5 }

// kernel: _lambda_.3
= control target key start
LH: loop header
LB: loop body
LE: loop exit
PB: predicated region body
PF: predicated region fallthrough
CT: control target
= control target key end

     0   :  { %s776_s12 = smov 0   ;;  %s778_s13 = smov 0   ;;  %s973_s0 = inlined_call_operand.vmem [shape: bf16[2,256,8], index: 0, kind: input, shape index: {}]   ;;  %s974_s1 = inlined_call_operand.vmem [shape: f32[2,1,8], index: 1, kind: input, shape index: {}]   ;;  %s975_s2 = inlined_call_operand.vmem [shape: f32[2,1,8], index: 2, kind: input, shape index: {}]   ;;  %s976_s3 = inlined_call_operand.vmem [shape: f32[2,256,8], index: 3, kind: output, shape index: {}]  }
   0x1   :  { %s780_s14 = smov 0  }
   0x2 LB: > { %s25_s15 = sadd.s32 1, %s750_s13  ;;  %p618_p0 = scmp.ge.s32.totalorder %s754_s14, 1  ;;  %s754_s14 = sphi %s780_s14, %s13_s14   ;;  %s750_s13 = sphi %s778_s13, %s978_s13   ;;  %s746_s12 = sphi %s776_s12, %s977_s12  }
   0x3   : > { %p27_p1 = scmp.ge.s32.totalorder %s25_s15, 2  ;;  %p174_p2 = scmp.lt.s32.totalorder %s754_s14, 3 }
   0x5   : > { %s980_s15 = smov (%p27_p1, %s25_s15), 0  ;;  %p175_p3 = pnand %p618_p0, %p174_p2 }
   0x6   : > { %p213_p4 = scmp.lt.s32.totalorder (!%p175_p3), %s746_s12, 1  ;;  %vm476_vm0 = vcmask (!%p175_p3), 64512  }
   0x7   : > { %178 = sbr.rel (%p175_p3) target bundleno = 72 (0x48), region = 32 }
   0xe   : > { %s982_s12 = smov (!%p213_p4, %s746_s12), 1 }
   0xf   : > { %s627_s16 = sshll.u32 %s982_s12, 7  ;;  %s224_s19 = scalar_lea.vmem %s974_s1, %s982_s12 }
  0x10   : > { %s804_s22 = scalar_lea.vmem %s973_s0, %s627_s16  ;;  %s227_s25 = scalar_lea.vmem %s975_s2, %s982_s12  ;;  %v811_v1 = vld [vmem:[%s224_s19] ss:$0 sm:$0xff] }
  0x11   : > { %v630_v0 = vld [vmem:[%s804_s22] sm:$0xff]   ;;  %v693_v2 = vld [vmem:[%s804_s22 + $0x8] sm:$0xff]   ;;  %v694_v7 = vld [vmem:[%s804_s22 + $0x10] sm:$0xff]   ;;  %s628_s26 = sshll.u32 %s982_s12, 8 }
  0x12   : > { %v631_v3 = vunpack.c.l.bf16 %v630_v0  ;;  %v632_v4 = vunpack.c.h.bf16 %v630_v0  ;;  %v635_v5 = vunpack.c.l.bf16 %v693_v2  ;;  %v636_v6 = vunpack.c.h.bf16 %v693_v2  ;;  %v695_v8 = vld [vmem:[%s804_s22 + $0x18] sm:$0xff]   ;;  %v816_v9 = vld [vmem:[%s227_s25] ss:$0 sm:$0xff]  ;;  %s838_s29 = scalar_lea.vmem %s976_s3, %s628_s26  ;;  %v697_v41 = vld [vmem:[%s804_s22 + $0x28] sm:$0xff]  }
  0x13   : > { %v639_v10 = vunpack.c.l.bf16 %v694_v7  ;;  %v640_v11 = vunpack.c.h.bf16 %v694_v7  ;;  %v643_v12 = vunpack.c.l.bf16 %v695_v8  ;;  %v644_v13 = vunpack.c.h.bf16 %v695_v8  ;;  %v696_v37 = vld [vmem:[%s804_s22 + $0x20] sm:$0xff]   ;;  %v698_v42 = vld [vmem:[%s804_s22 + $0x30] sm:$0xff]   ;;  %v699_v49 = vld [vmem:[%s804_s22 + $0x38] sm:$0xff]  }
  0x14   : > { %v309_v14 = vmul.f32 %v631_v3, %v811_v1  ;;  %v310_v15 = vmul.f32 %v632_v4, %v811_v1  ;;  %v311_v16 = vmul.f32 %v635_v5, %v811_v1  ;;  %v312_v17 = vmul.f32 %v636_v6, %v811_v1  ;;  %v700_v7 = vld [vmem:[%s804_s22 + $0x40] sm:$0xff]  }
  0x15   : > { %v313_v18 = vmul.f32 %v639_v10, %v811_v1  ;;  %v314_v19 = vmul.f32 %v640_v11, %v811_v1  ;;  %v315_v20 = vmul.f32 %v643_v12, %v811_v1  ;;  %v316_v21 = vmul.f32 %v644_v13, %v811_v1 }
  0x16   : > { %v348_v22 = vadd.f32 %v816_v9, %v309_v14  ;;  %v349_v23 = vadd.f32 %v816_v9, %v310_v15  ;;  %v350_v24 = vadd.f32 %v816_v9, %v311_v16  ;;  %v351_v25 = vadd.f32 %v816_v9, %v312_v17 }
  0x17   : > { %v352_v26 = vadd.f32 %v816_v9, %v313_v18  ;;  %v353_v27 = vadd.f32 %v816_v9, %v314_v19  ;;  %v354_v28 = vadd.f32 %v816_v9, %v315_v20  ;;  %v355_v29 = vadd.f32 %v816_v9, %v316_v21  ;;  %v701_v20 = vld [vmem:[%s804_s22 + $0x48] sm:$0xff]  }
  0x18   : > { %vm380_vm1 = vcmp.ge.f32.partialorder %v348_v22, 0.0  ;;  %v412_v30 = vmul.f32 0.2, %v348_v22  ;;  %vm381_vm2 = vcmp.ge.f32.partialorder %v349_v23, 0.0  ;;  %v413_v31 = vmul.f32 0.2, %v349_v23 }
  0x19   : > { %vm382_vm3 = vcmp.ge.f32.partialorder %v350_v24, 0.0  ;;  %v414_v32 = vmul.f32 0.2, %v350_v24  ;;  %vm383_vm4 = vcmp.ge.f32.partialorder %v351_v25, 0.0  ;;  %v415_v33 = vmul.f32 0.2, %v351_v25 }
  0x1a   : > { %v444_v34 = vsel %vm380_vm1, %v348_v22, %v412_v30  ;;  %v445_v35 = vsel %vm381_vm2, %v349_v23, %v413_v31  ;;  %vm384_vm5 = vcmp.ge.f32.partialorder %v352_v26, 0.0  ;;  %v416_v36 = vmul.f32 0.2, %v352_v26 }
  0x1b   : > { %477 = vst.msk [vmem:[%s838_s29] sm:$0xff] %vm476_vm0, %v444_v34  ;;  %478 = vst.msk [vmem:[%s838_s29 + $0x8] sm:$0xff] %vm476_vm0, %v445_v35  ;;  %v446_v38 = vsel %vm382_vm3, %v350_v24, %v414_v32  ;;  %v447_v39 = vsel %vm383_vm4, %v351_v25, %v415_v33  ;;  %vm385_vm6 = vcmp.ge.f32.partialorder %v353_v27, 0.0  ;;  %v417_v40 = vmul.f32 0.2, %v353_v27  ;;  %v702_v25 = vld [vmem:[%s804_s22 + $0x50] sm:$0xff]  }
  0x1c   : > { %479 = vst.msk [vmem:[%s838_s29 + $0x10] sm:$0xff] %vm476_vm0, %v446_v38  ;;  %480 = vst.msk [vmem:[%s838_s29 + $0x18] sm:$0xff] %vm476_vm0, %v447_v39  ;;  %v448_v43 = vsel %vm384_vm5, %v352_v26, %v416_v36  ;;  %vm386_vm7 = vcmp.ge.f32.partialorder %v354_v28, 0.0  ;;  %v418_v44 = vmul.f32 0.2, %v354_v28  ;;  %vm387_vm8 = vcmp.ge.f32.partialorder %v355_v29, 0.0 }
  0x1d   : > { %481 = vst.msk [vmem:[%s838_s29 + $0x20] sm:$0xff] %vm476_vm0, %v448_v43  ;;  %v449_v45 = vsel %vm385_vm6, %v353_v27, %v417_v40  ;;  %v419_v46 = vmul.f32 0.2, %v355_v29  ;;  %v647_v47 = vunpack.c.l.bf16 %v696_v37  ;;  %v648_v48 = vunpack.c.h.bf16 %v696_v37  ;;  %v703_v43 = vld [vmem:[%s804_s22 + $0x58] sm:$0xff]  }
  0x1e   : > { %482 = vst.msk [vmem:[%s838_s29 + $0x28] sm:$0xff] %vm476_vm0, %v449_v45  ;;  %v450_v50 = vsel %vm386_vm7, %v354_v28, %v418_v44  ;;  %v651_v51 = vunpack.c.l.bf16 %v697_v41  ;;  %v652_v52 = vunpack.c.h.bf16 %v697_v41  ;;  %v655_v53 = vunpack.c.l.bf16 %v698_v42 }
  0x1f   : > { %483 = vst.msk [vmem:[%s838_s29 + $0x30] sm:$0xff] %vm476_vm0, %v450_v50  ;;  %v451_v54 = vsel %vm387_vm8, %v355_v29, %v419_v46  ;;  %v317_v55 = vmul.f32 %v647_v47, %v811_v1  ;;  %v318_v56 = vmul.f32 %v648_v48, %v811_v1  ;;  %v656_v57 = vunpack.c.h.bf16 %v698_v42 }
  0x20   : > { %484 = vst.msk [vmem:[%s838_s29 + $0x38] sm:$0xff] %vm476_vm0, %v451_v54  ;;  %v319_v58 = vmul.f32 %v651_v51, %v811_v1  ;;  %v320_v59 = vmul.f32 %v652_v52, %v811_v1  ;;  %v321_v60 = vmul.f32 %v655_v53, %v811_v1  ;;  %v659_v61 = vunpack.c.l.bf16 %v699_v49  ;;  %v704_v54 = vld [vmem:[%s804_s22 + $0x60] sm:$0xff]  }
  0x21   : > { %v356_v62 = vadd.f32 %v816_v9, %v317_v55  ;;  %v357_v63 = vadd.f32 %v816_v9, %v318_v56  ;;  %v322_v0 = vmul.f32 %v656_v57, %v811_v1  ;;  %v660_v2 = vunpack.c.h.bf16 %v699_v49 }
  0x22   : > { %v358_v3 = vadd.f32 %v816_v9, %v319_v58  ;;  %v359_v4 = vadd.f32 %v816_v9, %v320_v59  ;;  %v360_v5 = vadd.f32 %v816_v9, %v321_v60  ;;  %v323_v6 = vmul.f32 %v659_v61, %v811_v1 }
  0x23   : > { %vm388_vm9 = vcmp.ge.f32.partialorder %v356_v62, 0.0  ;;  %v420_v8 = vmul.f32 0.2, %v356_v62  ;;  %vm389_vm10 = vcmp.ge.f32.partialorder %v357_v63, 0.0  ;;  %v421_v10 = vmul.f32 0.2, %v357_v63 }
  0x24   : > { %vm390_vm11 = vcmp.ge.f32.partialorder %v358_v3, 0.0  ;;  %v422_v11 = vmul.f32 0.2, %v358_v3  ;;  %vm391_vm12 = vcmp.ge.f32.partialorder %v359_v4, 0.0  ;;  %v423_v12 = vmul.f32 0.2, %v359_v4 }
  0x25   : > { %v452_v13 = vsel %vm388_vm9, %v356_v62, %v420_v8  ;;  %v453_v14 = vsel %vm389_vm10, %v357_v63, %v421_v10  ;;  %vm392_vm13 = vcmp.ge.f32.partialorder %v360_v5, 0.0  ;;  %v424_v15 = vmul.f32 0.2, %v360_v5 }
  0x26   : > { %485 = vst.msk [vmem:[%s838_s29 + $0x40] sm:$0xff] %vm476_vm0, %v452_v13  ;;  %486 = vst.msk [vmem:[%s838_s29 + $0x48] sm:$0xff] %vm476_vm0, %v453_v14  ;;  %v454_v16 = vsel %vm390_vm11, %v358_v3, %v422_v11  ;;  %v455_v17 = vsel %vm391_vm12, %v359_v4, %v423_v12  ;;  %v361_v18 = vadd.f32 %v816_v9, %v322_v0  ;;  %v663_v23 = vunpack.c.l.bf16 %v700_v7  ;;  %v705_v0 = vld [vmem:[%s804_s22 + $0x68] sm:$0xff]  }
  0x27   : > { %v362_v19 = vadd.f32 %v816_v9, %v323_v6  ;;  %487 = vst.msk [vmem:[%s838_s29 + $0x50] sm:$0xff] %vm476_vm0, %v454_v16  ;;  %488 = vst.msk [vmem:[%s838_s29 + $0x58] sm:$0xff] %vm476_vm0, %v455_v17  ;;  %v456_v21 = vsel %vm392_vm13, %v360_v5, %v424_v15  ;;  %v324_v22 = vmul.f32 %v660_v2, %v811_v1  ;;  %v664_v24 = vunpack.c.h.bf16 %v700_v7  ;;  %v706_v2 = vld [vmem:[%s804_s22 + $0x70] sm:$0xff]  }
  0x28   : > { %489 = vst.msk [vmem:[%s838_s29 + $0x60] sm:$0xff] %vm476_vm0, %v456_v21  ;;  %vm393_vm14 = vcmp.ge.f32.partialorder %v361_v18, 0.0  ;;  %v425_v26 = vmul.f32 0.2, %v361_v18  ;;  %v325_v29 = vmul.f32 %v663_v23, %v811_v1  ;;  %v667_v31 = vunpack.c.l.bf16 %v701_v20  ;;  %v707_v21 = vld [vmem:[%s804_s22 + $0x78] sm:$0xff]  }
  0x29   : > { %vm394_vm15 = vcmp.ge.f32.partialorder %v362_v19, 0.0  ;;  %v426_v27 = vmul.f32 0.2, %v362_v19  ;;  %v363_v28 = vadd.f32 %v816_v9, %v324_v22  ;;  %v326_v30 = vmul.f32 %v664_v24, %v811_v1 }
  0x2a   : > { %v457_v32 = vsel %vm393_vm14, %v361_v18, %v425_v26  ;;  %v668_v34 = vunpack.c.h.bf16 %v701_v20  ;;  %v671_v35 = vunpack.c.l.bf16 %v702_v25  ;;  %v364_v37 = vadd.f32 %v816_v9, %v325_v29 }
  0x2b   : > { %v458_v33 = vsel %vm394_vm15, %v362_v19, %v426_v27  ;;  %490 = vst.msk [vmem:[%s838_s29 + $0x68] sm:$0xff] %vm476_vm0, %v457_v32  ;;  %vm395_vm1 = vcmp.ge.f32.partialorder %v363_v28, 0.0  ;;  %v427_v36 = vmul.f32 0.2, %v363_v28  ;;  %v365_v38 = vadd.f32 %v816_v9, %v326_v30 }
  0x2c   : > { %491 = vst.msk [vmem:[%s838_s29 + $0x70] sm:$0xff] %vm476_vm0, %v458_v33  ;;  %v327_v39 = vmul.f32 %v667_v31, %v811_v1  ;;  %v328_v40 = vmul.f32 %v668_v34, %v811_v1  ;;  %v329_v41 = vmul.f32 %v671_v35, %v811_v1  ;;  %v672_v42 = vunpack.c.h.bf16 %v702_v25 }
  0x2d   : > { %v459_v44 = vsel %vm395_vm1, %v363_v28, %v427_v36  ;;  %vm396_vm2 = vcmp.ge.f32.partialorder %v364_v37, 0.0  ;;  %v428_v45 = vmul.f32 0.2, %v364_v37  ;;  %vm397_vm3 = vcmp.ge.f32.partialorder %v365_v38, 0.0 }
  0x2e   : > { %492 = vst.msk [vmem:[%s838_s29 + $0x78] sm:$0xff] %vm476_vm0, %v459_v44  ;;  %v429_v46 = vmul.f32 0.2, %v365_v38  ;;  %v366_v47 = vadd.f32 %v816_v9, %v327_v39  ;;  %v367_v48 = vadd.f32 %v816_v9, %v328_v40  ;;  %v368_v49 = vadd.f32 %v816_v9, %v329_v41 }
  0x2f   : > { %v460_v50 = vsel %vm396_vm2, %v364_v37, %v428_v45  ;;  %v330_v51 = vmul.f32 %v672_v42, %v811_v1  ;;  %v675_v52 = vunpack.c.l.bf16 %v703_v43  ;;  %v676_v53 = vunpack.c.h.bf16 %v703_v43 }
  0x30   : > { %493 = vst.msk [vmem:[%s838_s29 + $0x80] sm:$0xff] %vm476_vm0, %v460_v50  ;;  %v461_v55 = vsel %vm397_vm3, %v365_v38, %v429_v46  ;;  %vm398_vm4 = vcmp.ge.f32.partialorder %v366_v47, 0.0  ;;  %v430_v56 = vmul.f32 0.2, %v366_v47  ;;  %vm399_vm5 = vcmp.ge.f32.partialorder %v367_v48, 0.0 }
  0x31   : > { %494 = vst.msk [vmem:[%s838_s29 + $0x88] sm:$0xff] %vm476_vm0, %v461_v55  ;;  %v431_v57 = vmul.f32 0.2, %v367_v48  ;;  %vm400_vm6 = vcmp.ge.f32.partialorder %v368_v49, 0.0  ;;  %v432_v58 = vmul.f32 0.2, %v368_v49  ;;  %v369_v59 = vadd.f32 %v816_v9, %v330_v51 }
  0x32   : > { %v462_v60 = vsel %vm398_vm4, %v366_v47, %v430_v56  ;;  %v331_v61 = vmul.f32 %v675_v52, %v811_v1  ;;  %v332_v62 = vmul.f32 %v676_v53, %v811_v1  ;;  %v679_v63 = vunpack.c.l.bf16 %v704_v54 }
  0x33   : > { %495 = vst.msk [vmem:[%s838_s29 + $0x90] sm:$0xff] %vm476_vm0, %v462_v60  ;;  %v463_v3 = vsel %vm399_vm5, %v367_v48, %v431_v57  ;;  %v464_v4 = vsel %vm400_vm6, %v368_v49, %v432_v58  ;;  %vm401_vm7 = vcmp.ge.f32.partialorder %v369_v59, 0.0  ;;  %v433_v5 = vmul.f32 0.2, %v369_v59 }
  0x34   : > { %496 = vst.msk [vmem:[%s838_s29 + $0x98] sm:$0xff] %vm476_vm0, %v463_v3  ;;  %497 = vst.msk [vmem:[%s838_s29 + $0xa0] sm:$0xff] %vm476_vm0, %v464_v4  ;;  %v370_v6 = vadd.f32 %v816_v9, %v331_v61  ;;  %v371_v7 = vadd.f32 %v816_v9, %v332_v62  ;;  %v333_v8 = vmul.f32 %v679_v63, %v811_v1  ;;  %v680_v10 = vunpack.c.h.bf16 %v704_v54 }
  0x35   : > { %v465_v11 = vsel %vm401_vm7, %v369_v59, %v433_v5  ;;  %v683_v12 = vunpack.c.l.bf16 %v705_v0  ;;  %v684_v13 = vunpack.c.h.bf16 %v705_v0  ;;  %v687_v14 = vunpack.c.l.bf16 %v706_v2 }
  0x36   : > { %498 = vst.msk [vmem:[%s838_s29 + $0xa8] sm:$0xff] %vm476_vm0, %v465_v11  ;;  %vm402_vm8 = vcmp.ge.f32.partialorder %v370_v6, 0.0  ;;  %v434_v15 = vmul.f32 0.2, %v370_v6  ;;  %vm403_vm9 = vcmp.ge.f32.partialorder %v371_v7, 0.0  ;;  %v372_v17 = vadd.f32 %v816_v9, %v333_v8 }
  0x37   : > { %v435_v16 = vmul.f32 0.2, %v371_v7  ;;  %v334_v18 = vmul.f32 %v680_v10, %v811_v1  ;;  %v335_v19 = vmul.f32 %v683_v12, %v811_v1  ;;  %v336_v20 = vmul.f32 %v684_v13, %v811_v1 }
  0x38   : > { %v466_v22 = vsel %vm402_vm8, %v370_v6, %v434_v15  ;;  %v337_v24 = vmul.f32 %v687_v14, %v811_v1  ;;  %v688_v25 = vunpack.c.h.bf16 %v706_v2  ;;  %vm404_vm10 = vcmp.ge.f32.partialorder %v372_v17, 0.0 }
  0x39   : > { %v467_v23 = vsel %vm403_vm9, %v371_v7, %v435_v16  ;;  %499 = vst.msk [vmem:[%s838_s29 + $0xb0] sm:$0xff] %vm476_vm0, %v466_v22  ;;  %v436_v26 = vmul.f32 0.2, %v372_v17  ;;  %v373_v27 = vadd.f32 %v816_v9, %v334_v18  ;;  %v374_v28 = vadd.f32 %v816_v9, %v335_v19 }
  0x3a   : > { %500 = vst.msk [vmem:[%s838_s29 + $0xb8] sm:$0xff] %vm476_vm0, %v467_v23  ;;  %v375_v29 = vadd.f32 %v816_v9, %v336_v20  ;;  %v376_v30 = vadd.f32 %v816_v9, %v337_v24  ;;  %v338_v31 = vmul.f32 %v688_v25, %v811_v1  ;;  %v691_v32 = vunpack.c.l.bf16 %v707_v21 }
  0x3b   : > { %v468_v33 = vsel %vm404_vm10, %v372_v17, %v436_v26  ;;  %vm405_vm11 = vcmp.ge.f32.partialorder %v373_v27, 0.0  ;;  %v437_v34 = vmul.f32 0.2, %v373_v27  ;;  %vm406_vm12 = vcmp.ge.f32.partialorder %v374_v28, 0.0 }
  0x3c   : > { %501 = vst.msk [vmem:[%s838_s29 + $0xc0] sm:$0xff] %vm476_vm0, %v468_v33  ;;  %v438_v35 = vmul.f32 0.2, %v374_v28  ;;  %vm407_vm13 = vcmp.ge.f32.partialorder %v375_v29, 0.0  ;;  %v439_v36 = vmul.f32 0.2, %v375_v29  ;;  %v377_v39 = vadd.f32 %v816_v9, %v338_v31 }
  0x3d   : > { %vm408_vm14 = vcmp.ge.f32.partialorder %v376_v30, 0.0  ;;  %v469_v37 = vsel %vm405_vm11, %v373_v27, %v437_v34  ;;  %v440_v38 = vmul.f32 0.2, %v376_v30  ;;  %v339_v40 = vmul.f32 %v691_v32, %v811_v1 }
  0x3e   : > { %502 = vst.msk [vmem:[%s838_s29 + $0xc8] sm:$0xff] %vm476_vm0, %v469_v37  ;;  %v470_v41 = vsel %vm406_vm12, %v374_v28, %v438_v35  ;;  %v471_v42 = vsel %vm407_vm13, %v375_v29, %v439_v36  ;;  %v692_v43 = vunpack.c.h.bf16 %v707_v21  ;;  %vm409_vm15 = vcmp.ge.f32.partialorder %v377_v39, 0.0 }
  0x3f   : > { %503 = vst.msk [vmem:[%s838_s29 + $0xd0] sm:$0xff] %vm476_vm0, %v470_v41  ;;  %504 = vst.msk [vmem:[%s838_s29 + $0xd8] sm:$0xff] %vm476_vm0, %v471_v42  ;;  %v472_v44 = vsel %vm408_vm14, %v376_v30, %v440_v38  ;;  %v441_v45 = vmul.f32 0.2, %v377_v39  ;;  %v378_v46 = vadd.f32 %v816_v9, %v339_v40 }
  0x40   : > { %505 = vst.msk [vmem:[%s838_s29 + $0xe0] sm:$0xff] %vm476_vm0, %v472_v44  ;;  %v340_v47 = vmul.f32 %v692_v43, %v811_v1 }
  0x41   : > { %v473_v48 = vsel %vm409_vm15, %v377_v39, %v441_v45  ;;  %vm410_vm1 = vcmp.ge.f32.partialorder %v378_v46, 0.0  ;;  %v442_v49 = vmul.f32 0.2, %v378_v46 }
  0x42   : > { %506 = vst.msk [vmem:[%s838_s29 + $0xe8] sm:$0xff] %vm476_vm0, %v473_v48  ;;  %v379_v50 = vadd.f32 %v816_v9, %v340_v47 }
  0x43   : > { %v474_v51 = vsel %vm410_vm1, %v378_v46, %v442_v49 }
  0x44   : > { %507 = vst.msk [vmem:[%s838_s29 + $0xf0] sm:$0xff] %vm476_vm0, %v474_v51  ;;  %vm411_vm2 = vcmp.ge.f32.partialorder %v379_v50, 0.0  ;;  %v443_v52 = vmul.f32 0.2, %v379_v50 }
  0x46   : > { %v475_v53 = vsel %vm411_vm2, %v379_v50, %v443_v52 }
  0x47   : > { %508 = vst.msk [vmem:[%s838_s29 + $0xf8] sm:$0xff] %vm476_vm0, %v475_v53 }
  0x48 PF: > { %s13_s14 = sadd.s32 1, %s754_s14   ;;  %s977_s12 = smov %s750_s13 }
  0x49   : > { %p10_p5 = scmp.ge.s32.totalorder %s13_s14, 4   ;;  %s978_s13 = smov %s980_s15 }
  0x4b   :  { %12 = sbr.rel (!%p10_p5) target bundleno = 2 (0x2), region = 68 }

// kernel: _lambda_.2
= control target key start
LH: loop header
LB: loop body
LE: loop exit
PB: predicated region body
PF: predicated region fallthrough
CT: control target
= control target key end

     0   :  { %s1704_s15 = smov 0   ;;  %s1706_s16 = smov 0   ;;  %s2083_s0 = inlined_call_operand.vmem [shape: bf16[2,18,18,4], index: 0, kind: input, shape index: {}]   ;;  %s2084_s1 = inlined_call_operand.vmem [shape: bf16[1,36,8], index: 1, kind: input, shape index: {}]   ;;  %s2085_s2 = inlined_call_operand.vmem [shape: f32[1,8], index: 2, kind: input, shape index: {}]   ;;  %s2086_s3 = inlined_call_operand.vmem [shape: bf16[2,256,8], index: 3, kind: output, shape index: {0}]   ;;  %s2087_s4 = inlined_call_operand.vmem [shape: f32[2,2,8], index: 4, kind: output, shape index: {1}]  }
   0x1   :  { %s1708_s17 = smov 0   ;;  %s1710_s18 = smov 0  }
   0x2   :  { %s1712_s19 = smov 0  }
   0x3 LB: > { %s24_s20 = sadd.s32 1, %s1661_s17  ;;  %s27_s21 = sadd.s32 1, %s1665_s18  ;;  %s1669_s19 = sphi %s1712_s19, %s15_s19   ;;  %s1665_s18 = sphi %s1710_s18, %s2095_s18   ;;  %s1661_s17 = sphi %s1708_s17, %s2094_s17   ;;  %s1657_s16 = sphi %s1706_s16, %s2093_s16   ;;  %s1653_s15 = sphi %s1704_s15, %s2092_s15  }
   0x4   : > { %p25_p0 = scmp.ge.s32.totalorder %s24_s20, 4  ;;  %p1384_p1 = scmp.ge.s32.totalorder %s1669_s19, 1 }
   0x5   : > { %p179_p2 = scmp.lt.s32.totalorder %s1669_s19, 9 }
   0x6   : > { %s2097_s20 = smov (%p25_p0, %s24_s20), 0  ;;  %s2099_s21 = smov (!%p25_p0, %s27_s21), %s1665_s18 }
   0x7   : > { %p180_p3 = pnand %p1384_p1, %p179_p2  ;;  %p29_p4 = scmp.ge.s32.totalorder %s2099_s21, 2 }
   0x8   : > { %p213_p5 = scmp.lt.s32.totalorder (!%p180_p3), %s1657_s16, 1  ;;  %s1529_s22 = smul.u32 (!%p180_p3), 48, %s1653_s15  ;;  %vm438_vm0 = vcmask (!%p180_p3), 1042432   ;;  %vm439_vm1 = vcmask (!%p180_p3), 1046532   ;;  %vm286_vm3 = vsmask.f32 (!%p180_p3), 3328 }
   0x9   : > { %s2101_s21 = smov (%p29_p4, %s2099_s21), 0  ;;  %183 = sbr.rel (%p180_p3) target bundleno = 476 (0x1dc), region = 32 }
   0xa   : > { %vm1751_vm2 = vmor (!%p180_p3), %vm438_vm0, %vm439_vm1  ;;  %s1671_s6 = smov (!%p180_p3), 12   ;;  %vm287_vm4 = vsmask.f32 (!%p180_p3), 7440  ;;  %s1672_s7 = smov (!%p180_p3), 24   ;;  %vm269_vm6 = vcmask (!%p180_p3), 31744   ;;  %vm1076_vm7 = vcmask (!%p180_p3), 1041408  }
   0xb   : > { %s1673_s8 = smov (!%p180_p3), 20   ;;  %s1674_s9 = smov (!%p180_p3), 8   ;;  %vm1796_vm5 = vmor (!%p180_p3), %vm286_vm3, %vm287_vm4  ;;  %vm409_vm8 = vcmask (!%p180_p3), 64544   ;;  %vm493_vm9 = vcmask (!%p180_p3), 97344   ;;  %vm542_vm10 = vcmask (!%p180_p3), 130144   ;;  %vm679_vm11 = vcmask (!%p180_p3), 162944  }
   0xc   : > { %s1675_s10 = smov (!%p180_p3), 4   ;;  %s1676_s11 = smov (!%p180_p3), 16   ;;  %vm760_vm12 = vcmask (!%p180_p3), 195744   ;;  %vm809_vm13 = vcmask (!%p180_p3), 228544   ;;  %vm946_vm14 = vcmask (!%p180_p3), 261344   ;;  %vm1027_vm15 = vcmask (!%p180_p3), 294144  }
   0xd   : > { %vm1063_vm0 = vcmask (!%p180_p3), 293888   ;;  %s1386_s28 = sshll.u32 (!%p180_p3), %s1653_s15, 3  ;;  %vm1177_vm1 = vcmask (!%p180_p3), 60416   ;;  %p1525_p7 = scmp.ne.s32.totalorder (!%p180_p3), %s1653_s15, 0 }
   0xe   : > { %p221_p6 = scmp.lt.s32.totalorder (!%p180_p3), %s1386_s28, 31 }
  0x10   : > { %s2103_s16 = smov (!%p213_p5, %s1657_s16), 1  ;;  %s2105_s28 = smov (!%p221_p6, %s1386_s28), 31 }
  0x11   : > { %s1567_s23 = smul.u32 216, %s2103_s16  ;;  %s1389_s24 = sshll.u32 %s2103_s16, 1  ;;  %vm1241_vm3 = vcmask (!%p1525_p7), 57344  }
  0x12   : > { %s1744_s27 = scalar_lea.vmem %s2087_s4, %s1389_s24  ;;  %s1678_s24 = smov 32  }
  0x13   : > { %s217_s30 = scalar_lea.vmem %s2083_s0, %s1567_s23  ;;  %s1677_s23 = smov 28  }
  0x14   : > { %s1749_s5 = scalar_lea.vmem %s217_s30, %s1529_s22  ;;  %s1387_s29 = sshll.u32 %s2103_s16, 5 }
  0x15   : > { %v1616_v1 = vld [vmem:[%s1749_s5 + $0x18] sm:$0xff]   ;;  %v1617_v2 = vld [vmem:[%s1749_s5 + $0xc] sm:$0xff]   ;;  %v1618_v3 = vld [vmem:[%s1749_s5 + $0x24] sm:$0xff]   ;;  %s224_s30 = sadd.s32 %s1387_s29, %s2105_s28 }
  0x16   : > { %532 = vrot.lane.b32.xlu1 %v1616_v1, %s1671_s6  ;;  %530 = vrot.lane.b32.xlu0 %v1617_v2, %s1671_s6  ;;  %v1619_v4 = vld [vmem:[%s1749_s5 + $0x18] sm:$0xff]   ;;  %v1439_v5 = vld [vmem:[%s1749_s5 + $0xc] sm:$0xe] }
  0x17   : > { %v1440_v6 = vld [vmem:[%s1749_s5 + $0x10] sm:$0xf]  ;;  %v1441_v7 = vld [vmem:[%s1749_s5 + $0x14] sm:$0x1]  ;;  %v1451_v8 = vrot.slane %v1439_v5, 9 }
  0x18   : > { %v710_v9 = vrot.slane %v1440_v6, 5  ;;  %v713_v10 = vrot.slane %v1441_v7, 5  ;;  %v414_v11 = vld [vmem:[%s1749_s5] sm:$0xe]  ;;  %v415_v12 = vld [vmem:[%s1749_s5 + $0x4] sm:$0xf] }
  0x19   : > { %v416_v13 = vld [vmem:[%s1749_s5 + $0x8] sm:$0x1]  ;;  %v1401_v14 = vrot.slane %v414_v11, 9  ;;  %v443_v17 = vrot.slane %v415_v12, 5  ;;  %v417_v19 = vld [vmem:[%s1749_s5 + $0xc] sm:$0xe] }
  0x1a   : > { %799 = vrot.lane.b32.xlu1 %v1618_v3, %s1672_s7  ;;  %797 = vrot.lane.b32.xlu0 %v1619_v4, %s1672_s7  ;;  %v711_v15 = vsel %vm1751_vm2, %v1451_v8, %v710_v9  ;;  %v712_v16 = vrot.slane %v710_v9, 4  ;;  %v446_v18 = vrot.slane %v416_v13, 5  ;;  %v418_v20 = vld [vmem:[%s1749_s5 + $0x10] sm:$0xf]  ;;  %v419_v21 = vld [vmem:[%s1749_s5 + $0x14] sm:$0x1] }
  0x1b   : > { %v1402_v22 = vrot.slane %v417_v19, 9  ;;  %v444_v24 = vsel %vm1751_vm2, %v1401_v14, %v443_v17  ;;  %v445_v25 = vrot.slane %v443_v17, 4  ;;  %v450_v26 = vrot.slane %v418_v20, 5  ;;  %v274_v27 = vld [vmem:[%s1749_s5] sm:$0xf] }
  0x1c   : > { %v714_v23 = vsel %vm1751_vm2, %v712_v16, %v713_v10  ;;  %v275_v28 = vld [vmem:[%s1749_s5 + $0x4] sm:$0xf]  ;;  %v453_v30 = vrot.slane %v419_v21, 5  ;;  %v276_v31 = vld [vmem:[%s1749_s5 + $0x8] sm:$0x1]  ;;  %v290_v32 = vshrl.u32 %v274_v27, 16 }
  0x1d   : > { %v1455_v29 = vcombine.low %v711_v15, %v714_v23  ;;  %v293_v33 = vshll.u32 %v274_v27, 16  ;;  %v447_v34 = vsel %vm1751_vm2, %v445_v25, %v446_v18  ;;  %v451_v35 = vsel %vm1751_vm2, %v1402_v22, %v450_v26  ;;  %v1442_v38 = vld [vmem:[%s1749_s5 + $0x18] sm:$0xe]  ;;  %v1443_v39 = vld [vmem:[%s1749_s5 + $0x1c] sm:$0xf] }
  0x1e   : > { %v452_v36 = vrot.slane %v450_v26, 4  ;;  %v299_v37 = vshll.u32 %v275_v28, 16  ;;  %v1405_v40 = vcombine.low %v444_v24, %v447_v34  ;;  %v292_v41 = vrot.slane %v290_v32, 4  ;;  %v1444_v44 = vld [vmem:[%s1749_s5 + $0x20] sm:$0x1] }
  0x1f   : > { %748 = vrot.lane.b32.xlu0 %v1455_v29, %s1673_s8  ;;  %v295_v42 = vrot.slane %v293_v33, 5  ;;  %v303_v43 = vshrl.u32 %v275_v28, 16  ;;  %v309_v47 = vshll.u32 %v276_v31, 16  ;;  %v1452_v48 = vrot.slane %v1442_v38, 9  ;;  %v277_v49 = vld [vmem:[%s1749_s5 + $0xc] sm:$0xf] }
  0x20   : > { %v454_v45 = vsel %vm1751_vm2, %v452_v36, %v453_v30  ;;  %v301_v46 = vrot.slane %v299_v37, 5  ;;  %481 = vrot.lane.b32.xlu1 %v1405_v40, %s1674_s9  ;;  %v717_v53 = vrot.slane %v1443_v39, 5  ;;  %v278_v54 = vld [vmem:[%s1749_s5 + $0x10] sm:$0xf]  ;;  %v720_v57 = vrot.slane %v1444_v44, 5 }
  0x21   : > { %v1406_v50 = vcombine.low %v451_v35, %v454_v45  ;;  %v296_v51 = vor.u32 %v295_v42, %v292_v41  ;;  %v305_v52 = vrot.slane %v303_v43, 4  ;;  %v311_v56 = vrot.slane %v309_v47, 5  ;;  %v279_v58 = vld [vmem:[%s1749_s5 + $0x14] sm:$0x1]  ;;  %v1426_v6 = vld [vmem:[%s1749_s5 + $0x18] sm:$0xf] }
  0x22   : > { %v314_v59 = vshrl.u32 %v277_v49, 16  ;;  %v317_v60 = vshll.u32 %v277_v49, 16  ;;  %v718_v63 = vsel %vm1751_vm2, %v1452_v48, %v717_v53  ;;  %v719_v1 = vrot.slane %v717_v53, 4  ;;  %v1427_v11 = vld [vmem:[%s1749_s5 + $0x1c] sm:$0xf] }
  0x23   : > { %v297_v61 = vrot.slane %v296_v51, 4  ;;  %v306_v62 = vor.u32 %v305_v52, %v301_v46  ;;  %v323_v4 = vshll.u32 %v278_v54, 16  ;;  %v327_v5 = vshrl.u32 %v278_v54, 16  ;;  %v1428_v16 = vld [vmem:[%s1749_s5 + $0x20] sm:$0x1] }
  0x24   : > { %v316_v2 = vrot.slane %v314_v59, 4  ;;  %v319_v3 = vrot.slane %v317_v60, 5  ;;  %483 = vrot.lane.b32.xlu1 %v1406_v50, %s1674_s9  ;;  %v721_v9 = vsel %vm1751_vm2, %v719_v1, %v720_v57  ;;  %v333_v10 = vshll.u32 %v279_v58, 16  ;;  %v1423_v21 = vld [vmem:[%s1749_s5 + $0xc] sm:$0xf] }
  0x25   : > { %v302_v7 = vsel %vm1796_vm5, %v297_v61, %v301_v46  ;;  %v307_v8 = vrot.slane %v306_v62, 4  ;;  %v1456_v12 = vcombine.low %v718_v63, %v721_v9  ;;  %v325_v14 = vrot.slane %v323_v4, 5  ;;  %v1424_v30 = vld [vmem:[%s1749_s5 + $0x10] sm:$0xf]  ;;  %v1425_v34 = vld [vmem:[%s1749_s5 + $0x14] sm:$0x1] }
  0x26   : > { %v320_v13 = vor.u32 %v319_v3, %v316_v2  ;;  %v329_v15 = vrot.slane %v327_v5, 4  ;;  %v335_v18 = vrot.slane %v333_v10, 5  ;;  %v584_v19 = vshrl.u32 %v1426_v6, 16  ;;  %v1473_v40 = vld [vmem:[%s1749_s5 + $0x18] sm:$0xf] }
  0x27   : > { %v312_v17 = vsel %vm1796_vm5, %v307_v8, %v311_v56  ;;  %v587_v20 = vshll.u32 %v1426_v6, 16  ;;  %v593_v25 = vshll.u32 %v1427_v11, 16  ;;  %v597_v28 = vshrl.u32 %v1427_v11, 16  ;;  %v1474_v49 = vld [vmem:[%s1749_s5 + $0x1c] sm:$0xf] }
  0x28   : > { %v1397_v22 = vcombine.low %v302_v7, %v312_v17  ;;  %v321_v23 = vrot.slane %v320_v13, 4  ;;  %v330_v24 = vor.u32 %v329_v15, %v325_v14  ;;  %750 = vrot.lane.b32.xlu1 %v1456_v12, %s1673_s8  ;;  %v586_v26 = vrot.slane %v584_v19, 4  ;;  %v1475_v58 = vld [vmem:[%s1749_s5 + $0x20] sm:$0x1]  ;;  %v1476_v1 = vld [vmem:[%s1749_s5 + $0x24] sm:$0xf] }
  0x29   : > { %v589_v27 = vrot.slane %v587_v20, 5  ;;  %v603_v29 = vshll.u32 %v1428_v16, 16  ;;  %v595_v33 = vrot.slane %v593_v25, 5  ;;  %v560_v35 = vshrl.u32 %v1423_v21, 16  ;;  %v1477_v6 = vld [vmem:[%s1749_s5 + $0x28] sm:$0xf] }
  0x2a   : > { %397 = vrot.lane.b32.xlu0 %v1397_v22, %s1675_s10  ;;  %v326_v31 = vsel %vm1796_vm5, %v321_v23, %v325_v14  ;;  %v331_v32 = vrot.slane %v330_v24, 4  ;;  %v599_v37 = vrot.slane %v597_v28, 4  ;;  %v563_v39 = vshll.u32 %v1423_v21, 16  ;;  %v1478_v14 = vld [vmem:[%s1749_s5 + $0x2c] sm:$0x1]  ;;  %v1626_v22 = vld [vmem:[%s2084_s1] sm:$0xff]  }
  0x2b   : > { %v590_v36 = vor.u32 %v589_v27, %v586_v26  ;;  %v605_v38 = vrot.slane %v603_v29, 5  ;;  %v562_v42 = vrot.slane %v560_v35, 4  ;;  %v569_v43 = vshll.u32 %v1424_v30, 16  ;;  %v1489_v16 = vld [vmem:[%s1749_s5 + $0x18] sm:$0xe]  ;;  %1545 = vmatprep.subr.bf16.mxu0 %v1626_v22  ;;  %1559 = vmatprep.subr.bf16.mxu1 %v1626_v22 }
  0x2c   : > { %v336_v41 = vsel %vm1796_vm5, %v331_v32, %v335_v18  ;;  %v573_v44 = vshrl.u32 %v1424_v30, 16  ;;  %v600_v47 = vor.u32 %v599_v37, %v595_v33  ;;  %v565_v48 = vrot.slane %v563_v39, 5  ;;  %v1490_v21 = vld [vmem:[%s1749_s5 + $0x1c] sm:$0xf]  ;;  %v1491_v27 = vld [vmem:[%s1749_s5 + $0x20] sm:$0x1]  ;;  %1546 = vmatpush3.bf16.msra.mxu0 %v1626_v22  ;;  %1562 = vmatpush3.bf16.msra.mxu1 %v1626_v22 }
  0x2d   : > { %v1398_v45 = vcombine.low %v326_v31, %v336_v41  ;;  %v591_v46 = vrot.slane %v590_v36, 4  ;;  %v571_v50 = vrot.slane %v569_v43, 5  ;;  %v579_v52 = vshll.u32 %v1425_v34, 16  ;;  %v280_v32 = vld [vmem:[%s1749_s5 + $0x18] sm:$0xf] }
  0x2e   : > { %v575_v51 = vrot.slane %v573_v44, 4  ;;  %v827_v53 = vshrl.u32 %v1473_v40, 16  ;;  %v601_v56 = vrot.slane %v600_v47, 4  ;;  %v566_v57 = vor.u32 %v565_v48, %v562_v42  ;;  %v281_v37 = vld [vmem:[%s1749_s5 + $0x1c] sm:$0xf] }
  0x2f   : > { %399 = vrot.lane.b32.xlu0 %v1398_v45, %s1675_s10  ;;  %v596_v54 = vsel %vm1796_vm5, %v591_v46, %v595_v33  ;;  %v830_v59 = vshll.u32 %v1473_v40, 16  ;;  %v581_v61 = vrot.slane %v579_v52, 5  ;;  %v836_v63 = vshll.u32 %v1474_v49, 16  ;;  %v282_v42 = vld [vmem:[%s1749_s5 + $0x20] sm:$0x1] }
  0x30   : > { %v576_v60 = vor.u32 %v575_v51, %v571_v50  ;;  %v829_v62 = vrot.slane %v827_v53, 4  ;;  %v606_v2 = vsel %vm1796_vm5, %v601_v56, %v605_v38  ;;  %v567_v3 = vrot.slane %v566_v57, 4  ;;  %v1492_v43 = vld [vmem:[%s1749_s5 + $0x24] sm:$0xe]  ;;  %v1493_v52 = vld [vmem:[%s1749_s5 + $0x28] sm:$0xf] }
  0x31   : > { %v832_v4 = vrot.slane %v830_v59, 5  ;;  %v840_v5 = vshrl.u32 %v1474_v49, 16  ;;  %v1436_v7 = vcombine.low %v596_v54, %v606_v2  ;;  %v838_v9 = vrot.slane %v836_v63, 5  ;;  %v1628_v59 = vld [vmem:[%s2084_s1 + $0x8] sm:$0xff]   ;;  %v422_v22 = vld [vmem:[%s1749_s5 + $0x20] sm:$0x1] }
  0x32   : > { %v577_v8 = vrot.slane %v576_v60, 4  ;;  %v846_v10 = vshll.u32 %v1475_v58, 16  ;;  %v572_v11 = vsel %vm1796_vm5, %v567_v3, %v571_v50  ;;  %v851_v15 = vshrl.u32 %v1476_v1, 16  ;;  %v1494_v58 = vld [vmem:[%s1749_s5 + $0x2c] sm:$0x1]  ;;  %1547 = vmatprep.subr.bf16.mxu0 %v1628_v59  ;;  %1560 = vmatprep.subr.bf16.mxu1 %v1628_v59 }
  0x33   : > { %v833_v12 = vor.u32 %v832_v4, %v829_v62  ;;  %v842_v13 = vrot.slane %v840_v5, 4  ;;  %669 = vrot.lane.b32.xlu1 %v1436_v7, %s1676_s11  ;;  %v854_v19 = vshll.u32 %v1476_v1, 16  ;;  %v860_v20 = vshll.u32 %v1477_v6, 16  ;;  %v283_v1 = vld [vmem:[%s1749_s5 + $0x24] sm:$0xf]  ;;  %1548 = vmatpush3.bf16.msra.mxu0 %v1628_v59 }
  0x34   : > { %v582_v17 = vsel %vm1796_vm5, %v577_v8, %v581_v61  ;;  %v848_v18 = vrot.slane %v846_v10, 5  ;;  %v853_v26 = vrot.slane %v851_v15, 4  ;;  %v864_v30 = vshrl.u32 %v1477_v6, 16  ;;  %v284_v10 = vld [vmem:[%s1749_s5 + $0x28] sm:$0xf]  ;;  %1563 = vmatpush3.bf16.msra.mxu1 %v1628_v59 }
  0x35   : > { %v1435_v23 = vcombine.low %v572_v11, %v582_v17  ;;  %v834_v24 = vrot.slane %v833_v12, 4  ;;  %v843_v25 = vor.u32 %v842_v13, %v838_v9  ;;  %v856_v28 = vrot.slane %v854_v19, 5 }
  0x36   : > { %v862_v29 = vrot.slane %v860_v20, 5  ;;  %v870_v31 = vshll.u32 %v1478_v14, 16  ;;  %v1501_v35 = vrot.slane %v1489_v16, 9  ;;  %v977_v36 = vrot.slane %v1490_v21, 5  ;;  %v285_v14 = vld [vmem:[%s1749_s5 + $0x2c] sm:$0x1] }
  0x37   : > { %667 = vrot.lane.b32.xlu0 %v1435_v23, %s1676_s11  ;;  %v839_v33 = vsel %vm1796_vm5, %v834_v24, %v838_v9  ;;  %v844_v34 = vrot.slane %v843_v25, 4  ;;  %v857_v38 = vor.u32 %v856_v28, %v853_v26  ;;  %v866_v39 = vrot.slane %v864_v30, 4  ;;  %v420_v16 = vld [vmem:[%s1749_s5 + $0x18] sm:$0xe]  ;;  %v421_v21 = vld [vmem:[%s1749_s5 + $0x1c] sm:$0xf] }
  0x38   : > { %v872_v40 = vrot.slane %v870_v31, 5  ;;  %v980_v41 = vrot.slane %v1491_v27, 5  ;;  %v978_v45 = vsel %vm1751_vm2, %v1501_v35, %v977_v36  ;;  %v979_v46 = vrot.slane %v977_v36, 4  ;;  %v423_v23 = vld [vmem:[%s1749_s5 + $0x24] sm:$0xe] }
  0x39   : > { %v849_v44 = vsel %vm1796_vm5, %v844_v34, %v848_v18  ;;  %v338_v47 = vshrl.u32 %v280_v32, 16  ;;  %v858_v49 = vrot.slane %v857_v38, 4  ;;  %v867_v50 = vor.u32 %v866_v39, %v862_v29  ;;  %v424_v28 = vld [vmem:[%s1749_s5 + $0x28] sm:$0xf]  ;;  %v1429_v34 = vld [vmem:[%s1749_s5 + $0x24] sm:$0xf] }
  0x3a   : > { %v1485_v48 = vcombine.low %v839_v33, %v849_v44  ;;  %v341_v51 = vshll.u32 %v280_v32, 16  ;;  %v981_v53 = vsel %vm1751_vm2, %v979_v46, %v980_v41  ;;  %v347_v56 = vshll.u32 %v281_v37, 16 }
  0x3b   : > { %v340_v54 = vrot.slane %v338_v47, 4  ;;  %v351_v57 = vshrl.u32 %v281_v37, 16  ;;  %v863_v60 = vsel %vm1796_vm5, %v858_v49, %v862_v29  ;;  %v868_v61 = vrot.slane %v867_v50, 4  ;;  %v425_v29 = vld [vmem:[%s1749_s5 + $0x2c] sm:$0x1] }
  0x3c   : > { %934 = vrot.lane.b32.xlu0 %v1485_v48, %s1677_s23  ;;  %v1505_v62 = vcombine.low %v978_v45, %v981_v53  ;;  %v343_v63 = vrot.slane %v341_v51, 5  ;;  %v349_v2 = vrot.slane %v347_v56, 5  ;;  %v357_v4 = vshll.u32 %v282_v42, 16  ;;  %v1430_v50 = vld [vmem:[%s1749_s5 + $0x28] sm:$0xf] }
  0x3d   : > { %v353_v3 = vrot.slane %v351_v57, 4  ;;  %v1502_v5 = vrot.slane %v1492_v43, 9  ;;  %v873_v6 = vsel %vm1796_vm5, %v868_v61, %v872_v40  ;;  %v984_v8 = vrot.slane %v1493_v52, 5 }
  0x3e   : > { %v344_v7 = vor.u32 %v343_v63, %v340_v54  ;;  %v987_v9 = vrot.slane %v1494_v58, 5  ;;  %v1486_v11 = vcombine.low %v863_v60, %v873_v6  ;;  %v359_v13 = vrot.slane %v357_v4, 5  ;;  %v1431_v60 = vld [vmem:[%s1749_s5 + $0x2c] sm:$0x1]  ;;  %v1433_v4 = vld [vmem:[%s1749_s5 + $0x34] sm:$0xf] }
  0x3f   : > { %v354_v12 = vor.u32 %v353_v3, %v349_v2  ;;  %v362_v15 = vshrl.u32 %v283_v1, 16  ;;  %v985_v18 = vsel %vm1751_vm2, %v1502_v5, %v984_v8  ;;  %v986_v19 = vrot.slane %v984_v8, 4  ;;  %v1432_v3 = vld [vmem:[%s1749_s5 + $0x30] sm:$0xf]  ;;  %v1620_v8 = vld [vmem:[%s1749_s5 + $0x24] sm:$0xff]  }
  0x40   : > { %1015 = vrot.lane.b32.xlu0 %v1505_v62, %s1678_s24  ;;  %v345_v17 = vrot.slane %v344_v7, 4  ;;  %v365_v20 = vshll.u32 %v283_v1, 16  ;;  %936 = vrot.lane.b32.xlu1 %v1486_v11, %s1677_s23  ;;  %v371_v26 = vshll.u32 %v284_v10, 16  ;;  %v375_v27 = vshrl.u32 %v284_v10, 16  ;;  %v1434_v10 = vld [vmem:[%s1749_s5 + $0x38] sm:$0x1] }
  0x41   : > { %v355_v24 = vrot.slane %v354_v12, 4  ;;  %v364_v25 = vrot.slane %v362_v15, 4  ;;  %v988_v31 = vsel %vm1751_vm2, %v986_v19, %v987_v9  ;;  %v381_v33 = vshll.u32 %v285_v14, 16  ;;  %v1445_v11 = vld [vmem:[%s1749_s5 + $0x24] sm:$0xe] }
  0x42   : > { %v350_v30 = vsel %vm1796_vm5, %v345_v17, %v349_v2  ;;  %v367_v32 = vrot.slane %v365_v20, 5  ;;  %v1506_v36 = vcombine.low %v985_v18, %v988_v31  ;;  %v373_v37 = vrot.slane %v371_v26, 5  ;;  %v1447_v17 = vld [vmem:[%s1749_s5 + $0x2c] sm:$0x1] }
  0x43   : > { %v360_v35 = vsel %vm1796_vm5, %v355_v24, %v359_v13  ;;  %v377_v38 = vrot.slane %v375_v27, 4  ;;  %v383_v41 = vrot.slane %v381_v33, 5  ;;  %v1403_v42 = vrot.slane %v420_v16, 9  ;;  %v1446_v16 = vld [vmem:[%s1749_s5 + $0x28] sm:$0xf] }
  0x44   : > { %v1399_v39 = vcombine.low %v350_v30, %v360_v35  ;;  %v368_v40 = vor.u32 %v367_v32, %v364_v25  ;;  %1017 = vrot.lane.b32.xlu0 %v1506_v36, %s1678_s24  ;;  %v457_v44 = vrot.slane %v421_v21, 5  ;;  %v460_v45 = vrot.slane %v422_v22, 5  ;;  %v1448_v22 = vld [vmem:[%s1749_s5 + $0x30] sm:$0xe]  ;;  %v1450_v24 = vld [vmem:[%s1749_s5 + $0x38] sm:$0x1] }
  0x45   : > { %v378_v43 = vor.u32 %v377_v38, %v373_v37  ;;  %v1404_v46 = vrot.slane %v423_v23, 9  ;;  %v464_v48 = vrot.slane %v424_v28, 5  ;;  %v467_v49 = vrot.slane %v425_v29, 5  ;;  %v1449_v23 = vld [vmem:[%s1749_s5 + $0x34] sm:$0xf] }
  0x46   : > { %401 = vrot.lane.b32.xlu1 %v1399_v39, %s1675_s10  ;;  %v369_v47 = vrot.slane %v368_v40, 4  ;;  %v608_v51 = vshrl.u32 %v1429_v34, 16  ;;  %v458_v53 = vsel %vm1751_vm2, %v1403_v42, %v457_v44  ;;  %v459_v54 = vrot.slane %v457_v44, 4  ;;  %v1621_v38 = vld [vmem:[%s1749_s5 + $0x30] sm:$0xff]  }
  0x47   : > { %v379_v52 = vrot.slane %v378_v43, 4  ;;  %v611_v56 = vshll.u32 %v1429_v34, 16  ;;  %v465_v58 = vsel %vm1751_vm2, %v1404_v46, %v464_v48  ;;  %v466_v59 = vrot.slane %v464_v48, 4  ;;  %v1480_v43 = vld [vmem:[%s1749_s5 + $0x34] sm:$0xf] }
  0x48   : > { %v374_v57 = vsel %vm1796_vm5, %v369_v47, %v373_v37  ;;  %v610_v61 = vrot.slane %v608_v51, 4  ;;  %v461_v63 = vsel %vm1751_vm2, %v459_v54, %v460_v45  ;;  %v617_v2 = vshll.u32 %v1430_v50, 16  ;;  %v1479_v37 = vld [vmem:[%s1749_s5 + $0x30] sm:$0xf] }
  0x49   : > { %v384_v62 = vsel %vm1796_vm5, %v379_v52, %v383_v41  ;;  %v613_v1 = vrot.slane %v611_v56, 5  ;;  %v1407_v6 = vcombine.low %v458_v53, %v461_v63  ;;  %v468_v7 = vsel %vm1751_vm2, %v466_v59, %v467_v49  ;;  %v1481_v59 = vld [vmem:[%s1749_s5 + $0x38] sm:$0x1] }
  0x4a   : > { %v1400_v5 = vcombine.low %v374_v57, %v384_v62  ;;  %v621_v9 = vshrl.u32 %v1430_v50, 16  ;;  %v1408_v12 = vcombine.low %v465_v58, %v468_v7  ;;  %v619_v14 = vrot.slane %v617_v2, 5  ;;  %v1482_v62 = vld [vmem:[%s1749_s5 + $0x3c] sm:$0xf] }
  0x4b   : > { %v614_v13 = vor.u32 %v613_v1, %v610_v61  ;;  %v627_v15 = vshll.u32 %v1431_v60, 16  ;;  %485 = vrot.lane.b32.xlu0 %v1407_v6, %s1674_s9  ;;  %v632_v19 = vshrl.u32 %v1432_v3, 16  ;;  %v635_v20 = vshll.u32 %v1432_v3, 16 }
  0x4c   : > { %403 = vrot.lane.b32.xlu1 %v1400_v5, %s1675_s10  ;;  %v623_v18 = vrot.slane %v621_v9, 4  ;;  %v641_v21 = vshll.u32 %v1433_v4, 16  ;;  %v645_v27 = vshrl.u32 %v1433_v4, 16  ;;  %v651_v28 = vshll.u32 %v1434_v10, 16  ;;  %v1483_v4 = vld [vmem:[%s1749_s5 + $0x40] sm:$0xf] }
  0x4d   : > { %v615_v25 = vrot.slane %v614_v13, 4  ;;  %v629_v26 = vrot.slane %v627_v15, 5  ;;  %v634_v30 = vrot.slane %v632_v19, 4  ;;  %v637_v31 = vrot.slane %v635_v20, 5  ;;  %v1484_v9 = vld [vmem:[%s1749_s5 + $0x44] sm:$0x1] }
  0x4e   : > { %v624_v29 = vor.u32 %v623_v18, %v619_v14  ;;  %v643_v32 = vrot.slane %v641_v21, 5  ;;  %v647_v34 = vrot.slane %v645_v27, 4  ;;  %v653_v35 = vrot.slane %v651_v28, 5  ;;  %v1496_v19 = vld [vmem:[%s1749_s5 + $0x34] sm:$0xf] }
  0x4f   : > { %v620_v33 = vsel %vm1796_vm5, %v615_v25, %v619_v14  ;;  %v1453_v36 = vrot.slane %v1445_v11, 9  ;;  %534 = vrot.lane.b32.xlu0 %v1620_v8, %s1671_s6  ;;  %v638_v40 = vor.u32 %v637_v31, %v634_v30  ;;  %v724_v41 = vrot.slane %v1446_v16, 5  ;;  %v1495_v14 = vld [vmem:[%s1749_s5 + $0x30] sm:$0xe]  ;;  %v1623_v25 = vld [vmem:[%s1749_s5 + $0x3c] sm:$0xff]  }
  0x50   : > { %487 = vrot.lane.b32.xlu1 %v1408_v12, %s1674_s9  ;;  %v625_v39 = vrot.slane %v624_v29, 4  ;;  %v727_v42 = vrot.slane %v1447_v17, 5  ;;  %v648_v44 = vor.u32 %v647_v34, %v643_v32  ;;  %v1454_v45 = vrot.slane %v1448_v22, 9  ;;  %v1622_v20 = vld [vmem:[%s1749_s5 + $0x30] sm:$0xff]   ;;  %v1498_v30 = vld [vmem:[%s1749_s5 + $0x3c] sm:$0xe] }
  0x51   : > { %v731_v46 = vrot.slane %v1449_v23, 5  ;;  %v734_v47 = vrot.slane %v1450_v24, 5  ;;  %v639_v49 = vrot.slane %v638_v40, 4  ;;  %v725_v50 = vsel %vm1751_vm2, %v1453_v36, %v724_v41  ;;  %v1497_v24 = vld [vmem:[%s1749_s5 + $0x38] sm:$0x1]  ;;  %v1624_v31 = vld [vmem:[%s1749_s5] sm:$0xff]  }
  0x52   : > { %v630_v48 = vsel %vm1796_vm5, %v625_v39, %v629_v26  ;;  %v726_v51 = vrot.slane %v724_v41, 4  ;;  %v649_v53 = vrot.slane %v648_v44, 4  ;;  %v875_v60 = vshrl.u32 %v1479_v37, 16  ;;  %v1499_v36 = vld [vmem:[%s1749_s5 + $0x40] sm:$0xf]  ;;  %v1629_v44 = vld [vmem:[%s1749_s5 + $0x24] sm:$0xff]  }
  0x53   : > { %v1437_v52 = vcombine.low %v620_v33, %v630_v48  ;;  %v732_v54 = vsel %vm1751_vm2, %v1454_v45, %v731_v46  ;;  %v733_v56 = vrot.slane %v731_v46, 4  ;;  %v644_v57 = vsel %vm1796_vm5, %v639_v49, %v643_v32  ;;  %270 = vst.msk [vmem:[#allocation2] sm:$0xff] %vm269_vm6, %v1624_v31  ;;  %273 = vst.msk [vmem:[#allocation2 + $0x18] sm:$0xff] %vm269_vm6, %v1629_v44 }
  0x54   : > { %536 = vrot.lane.b32.xlu1 %v1621_v38, %s1671_s6  ;;  %v728_v58 = vsel %vm1751_vm2, %v726_v51, %v727_v42  ;;  %v878_v61 = vshll.u32 %v1479_v37, 16  ;;  %v654_v63 = vsel %vm1796_vm5, %v649_v53, %v653_v35  ;;  %v884_v3 = vshll.u32 %v1480_v43, 16  ;;  %v1625_v37 = vld [vmem:[%s1749_s5 + $0xc] sm:$0xff]   ;;  %v1500_v42 = vld [vmem:[%s1749_s5 + $0x44] sm:$0x1] }
  0x55   : > { %671 = vrot.lane.b32.xlu0 %v1437_v52, %s1676_s11  ;;  %v1457_v1 = vcombine.low %v725_v50, %v728_v58  ;;  %v735_v2 = vsel %vm1751_vm2, %v733_v56, %v734_v47  ;;  %v1438_v5 = vcombine.low %v644_v57, %v654_v63  ;;  %v877_v7 = vrot.slane %v875_v60, 4  ;;  %271 = vst.msk [vmem:[#allocation2 + $0x8] sm:$0xff] %vm269_vm6, %v1625_v37  ;;  %v1630_v60 = vld [vmem:[%s2084_s1 + $0x10] ss:$0 sps:$4 sm:$0x33]  }
  0x56   : > { %v1458_v6 = vcombine.low %v732_v54, %v735_v2  ;;  %v880_v8 = vrot.slane %v878_v61, 5  ;;  %v886_v10 = vrot.slane %v884_v3, 5  ;;  %v888_v11 = vshrl.u32 %v1480_v43, 16  ;;  %v1627_v43 = vld [vmem:[%s1749_s5 + $0x18] sm:$0xff]   ;;  %1565 = vmatprep.subr.msk.bf16.mxu0 %vm1076_vm7, %v1630_v60  ;;  %1566 = vmatprep.subr.msk.bf16.mxu1 %vm1076_vm7, %v1630_v60 }
  0x57   : > { %v894_v12 = vshll.u32 %v1481_v59, 16  ;;  %v899_v13 = vshrl.u32 %v1482_v62, 16  ;;  %v902_v16 = vshll.u32 %v1482_v62, 16  ;;  %v908_v17 = vshll.u32 %v1483_v4, 16  ;;  %272 = vst.msk [vmem:[#allocation2 + $0x10] sm:$0xff] %vm269_vm6, %v1627_v43 }
  0x58   : > { %673 = vrot.lane.b32.xlu1 %v1438_v5, %s1676_s11  ;;  %v881_v15 = vor.u32 %v880_v8, %v877_v7  ;;  %v912_v18 = vshrl.u32 %v1483_v4, 16  ;;  %v890_v21 = vrot.slane %v888_v11, 4  ;;  %v918_v23 = vshll.u32 %v1484_v9, 16 }
  0x59   : > { %752 = vrot.lane.b32.xlu0 %v1457_v1, %s1673_s8  ;;  %v901_v22 = vrot.slane %v899_v13, 4  ;;  %v904_v27 = vrot.slane %v902_v16, 5  ;;  %v910_v28 = vrot.slane %v908_v17, 5  ;;  %v896_v33 = vrot.slane %v894_v12, 5 }
  0x5a   : > { %v882_v26 = vrot.slane %v881_v15, 4  ;;  %v914_v29 = vrot.slane %v912_v18, 4  ;;  %v891_v32 = vor.u32 %v890_v21, %v886_v10  ;;  %v1503_v34 = vrot.slane %v1495_v14, 9 }
  0x5b   : > { %v991_v35 = vrot.slane %v1496_v19, 5  ;;  %v905_v38 = vor.u32 %v904_v27, %v901_v22  ;;  %v920_v40 = vrot.slane %v918_v23, 5  ;;  %v994_v41 = vrot.slane %v1497_v24, 5 }
  0x5c   : > { %754 = vrot.lane.b32.xlu1 %v1458_v6, %s1673_s8  ;;  %v915_v39 = vor.u32 %v914_v29, %v910_v28  ;;  %v887_v45 = vsel %vm1796_vm5, %v882_v26, %v886_v10  ;;  %v892_v46 = vrot.slane %v891_v32, 4  ;;  %v1504_v48 = vrot.slane %v1498_v30, 9 }
  0x5d   : > { %801 = vrot.lane.b32.xlu0 %v1622_v20, %s1672_s7  ;;  %v993_v47 = vrot.slane %v991_v35, 4  ;;  %v906_v49 = vrot.slane %v905_v38, 4  ;;  %v992_v51 = vsel %vm1751_vm2, %v1503_v34, %v991_v35  ;;  %v998_v52 = vrot.slane %v1499_v36, 5 }
  0x5e   : > { %v916_v50 = vrot.slane %v915_v39, 4  ;;  %v897_v53 = vsel %vm1796_vm5, %v892_v46, %v896_v33  ;;  %v1001_v56 = vrot.slane %v1500_v42, 5  ;;  %v1078_v3 = vsel %vm1076_vm7, %v1630_v60, 0  ;;  %v1509_v39 = vld [vmem:[%s2085_s2] ss:$0 sm:$0xff] }
  0x5f   : > { %v995_v54 = vsel %vm1751_vm2, %v993_v47, %v994_v41  ;;  %v1487_v57 = vcombine.low %v887_v45, %v897_v53  ;;  %v911_v58 = vsel %vm1796_vm5, %v906_v49, %v910_v28  ;;  %v999_v62 = vsel %vm1751_vm2, %v1504_v48, %v998_v52  ;;  %1550 = vmatpush3.bf16.msra.mxu0 %v1078_v3 }
  0x60   : > { %803 = vrot.lane.b32.xlu1 %v1623_v25, %s1672_s7  ;;  %v921_v59 = vsel %vm1796_vm5, %v916_v50, %v920_v40  ;;  %v1000_v63 = vrot.slane %v998_v52, 4  ;;  %v1507_v1 = vcombine.low %v992_v51, %v995_v54  ;;  %1564 = vmatpush3.bf16.msra.mxu1 %v1078_v3  ;;  %s1388_s7 = sshll.u32 %s224_s30, 2 }
  0x61   : > { %v1488_v61 = vcombine.low %v911_v58, %v921_v59  ;;  %938 = vrot.lane.b32.xlu0 %v1487_v57, %s1677_s23  ;;  %s2026_s10 = scalar_lea.vmem %s2086_s3, %s1388_s7 }
  0x62   : > { %v1002_v55 = vsel %vm1751_vm2, %v1000_v63, %v1001_v56  ;;  %vm1186_vm2 = vcmask 64512  }
  0x63   : > { %v1508_v2 = vcombine.low %v999_v62, %v1002_v55 }
  0x64   : > { %940 = vrot.lane.b32.xlu1 %v1488_v61, %s1677_s23 }
  0x65   : > { %1019 = vrot.lane.b32.xlu0 %v1507_v1, %s1678_s24 }
  0x68   : > { %1021 = vrot.lane.b32.xlu1 %v1508_v2, %s1678_s24 }
  0x88   : > { %v533_v4 = vpop.permute.xlu1 %532  ;;  %v531_v5 = vpop.permute.xlu0 %530 }
  0x8c   : > { %v800_v6 = vpop.permute.xlu1 %799  ;;  %v798_v7 = vpop.permute.xlu0 %797 }
  0x91   : > { %v749_v0 = vpop.permute.xlu0 %748 }
  0x92   : > { %v482_v8 = vpop.permute.xlu1 %481 }
  0x96   : > { %v484_v9 = vpop.permute.xlu1 %483 }
  0x9a   : > { %v751_v11 = vpop.permute.xlu1 %750 }
  0x9c   : > { %v398_v10 = vpop.permute.xlu0 %397 }
  0x9d   : > { %410 = vst.msk [vmem:[#allocation2] sm:$0xff] %vm409_vm8, %v398_v10 }
  0x9e   : > { %494 = vst.msk [vmem:[#allocation2] sm:$0xff] %vm493_vm9, %v482_v8 }
  0x9f   : > { %543 = vst.msk [vmem:[#allocation2] sm:$0xff] %vm542_vm10, %v531_v5 }
  0xa1   : > { %v400_v12 = vpop.permute.xlu0 %399 }
  0xa2   : > { %411 = vst.msk [vmem:[#allocation2 + $0x8] sm:$0xff] %vm409_vm8, %v400_v12 }
  0xa3   : > { %495 = vst.msk [vmem:[#allocation2 + $0x8] sm:$0xff] %vm493_vm9, %v484_v9 }
  0xa4   : > { %544 = vst.msk [vmem:[#allocation2 + $0x8] sm:$0xff] %vm542_vm10, %v533_v4 }
  0xa5   : > { %v670_v13 = vpop.permute.xlu1 %669 }
  0xa6   : > { %681 = vst.msk [vmem:[#allocation2 + $0x8] sm:$0xff] %vm679_vm11, %v670_v13 }
  0xa7   : > { %762 = vst.msk [vmem:[#allocation2 + $0x8] sm:$0xff] %vm760_vm12, %v751_v11 }
  0xa8   : > { %811 = vst.msk [vmem:[#allocation2 + $0x8] sm:$0xff] %vm809_vm13, %v800_v6 }
  0xa9   : > { %v668_v14 = vpop.permute.xlu0 %667 }
  0xaa   : > { %680 = vst.msk [vmem:[#allocation2] sm:$0xff] %vm679_vm11, %v668_v14 }
  0xab   : > { %761 = vst.msk [vmem:[#allocation2] sm:$0xff] %vm760_vm12, %v749_v0 }
  0xac   : > { %810 = vst.msk [vmem:[#allocation2] sm:$0xff] %vm809_vm13, %v798_v7 }
  0xae   : > { %v935_v15 = vpop.permute.xlu0 %934 }
  0xaf   : > { %947 = vst.msk [vmem:[#allocation2] sm:$0xff] %vm946_vm14, %v935_v15 }
  0xb2   : > { %v1016_v16 = vpop.permute.xlu0 %1015  ;;  %v937_v17 = vpop.permute.xlu1 %936 }
  0xb3   : > { %1028 = vst.msk [vmem:[#allocation2] sm:$0xff] %vm1027_vm15, %v1016_v16 }
  0xb4   : > { %948 = vst.msk [vmem:[#allocation2 + $0x8] sm:$0xff] %vm946_vm14, %v937_v17 }
  0xb6   : > { %v1018_v18 = vpop.permute.xlu0 %1017 }
  0xb7   : > { %1029 = vst.msk [vmem:[#allocation2 + $0x8] sm:$0xff] %vm1027_vm15, %v1018_v18 }
  0xb8   : > { %v402_v19 = vpop.permute.xlu1 %401 }
  0xb9   : > { %412 = vst.msk [vmem:[#allocation2 + $0x10] sm:$0xff] %vm409_vm8, %v402_v19 }
  0xba   : > { %v1032_v20 = vld [vmem:[#allocation2] sm:$0xff] }
  0xbb   : > { %1551 = vmatprep.mubr.msk.bf16.mxu0 %vm1063_vm0, %v1032_v20 }
  0xbd   : > { %v486_v22 = vpop.permute.xlu0 %485 }
  0xbe   : > { %v404_v21 = vpop.permute.xlu1 %403  ;;  %496 = vst.msk [vmem:[#allocation2 + $0x10] sm:$0xff] %vm493_vm9, %v486_v22  ;;  %v1033_v23 = vld [vmem:[#allocation2 + $0x8] sm:$0xff] }
  0xbf   : > { %413 = vst.msk [vmem:[#allocation2 + $0x18] sm:$0xff] %vm409_vm8, %v404_v21  ;;  %1552 = vmatmul.mubr.msk.bf16.vlgmr.msra.gmra.mrb[0].mxu0 %vm1063_vm0, %v1033_v23 }
  0xc1   : > { %v535_v25 = vpop.permute.xlu0 %534 }
  0xc2   : > { %v488_v24 = vpop.permute.xlu1 %487  ;;  %545 = vst.msk [vmem:[#allocation2 + $0x10] sm:$0xff] %vm542_vm10, %v535_v25 }
  0xc3   : > { %497 = vst.msk [vmem:[#allocation2 + $0x18] sm:$0xff] %vm493_vm9, %v488_v24 }
  0xc6   : > { %v537_v26 = vpop.permute.xlu1 %536 }
  0xc7   : > { %546 = vst.msk [vmem:[#allocation2 + $0x18] sm:$0xff] %vm542_vm10, %v537_v26  ;;  %v672_v27 = vpop.permute.xlu0 %671 }
  0xc8   : > { %682 = vst.msk [vmem:[#allocation2 + $0x10] sm:$0xff] %vm679_vm11, %v672_v27 }
  0xca   : > { %v674_v28 = vpop.permute.xlu1 %673 }
  0xcb   : > { %683 = vst.msk [vmem:[#allocation2 + $0x18] sm:$0xff] %vm679_vm11, %v674_v28  ;;  %v753_v29 = vpop.permute.xlu0 %752 }
  0xcc   : > { %763 = vst.msk [vmem:[#allocation2 + $0x10] sm:$0xff] %vm760_vm12, %v753_v29 }
  0xce   : > { %v755_v30 = vpop.permute.xlu1 %754 }
  0xcf   : > { %764 = vst.msk [vmem:[#allocation2 + $0x18] sm:$0xff] %vm760_vm12, %v755_v30  ;;  %v802_v31 = vpop.permute.xlu0 %801 }
  0xd0   : > { %812 = vst.msk [vmem:[#allocation2 + $0x10] sm:$0xff] %vm809_vm13, %v802_v31 }
  0xd2   : > { %v804_v32 = vpop.permute.xlu1 %803 }
  0xd3   : > { %813 = vst.msk [vmem:[#allocation2 + $0x18] sm:$0xff] %vm809_vm13, %v804_v32  ;;  %v939_v33 = vpop.permute.xlu0 %938 }
  0xd4   : > { %949 = vst.msk [vmem:[#allocation2 + $0x10] sm:$0xff] %vm946_vm14, %v939_v33 }
  0xd6   : > { %v941_v34 = vpop.permute.xlu1 %940 }
  0xd7   : > { %950 = vst.msk [vmem:[#allocation2 + $0x18] sm:$0xff] %vm946_vm14, %v941_v34  ;;  %v1020_v35 = vpop.permute.xlu0 %1019 }
  0xd8   : > { %1030 = vst.msk [vmem:[#allocation2 + $0x10] sm:$0xff] %vm1027_vm15, %v1020_v35 }
  0xda   : > { %v1022_v36 = vpop.permute.xlu1 %1021 }
  0xdb   : > { %1031 = vst.msk [vmem:[#allocation2 + $0x18] sm:$0xff] %vm1027_vm15, %v1022_v36 }
  0xdf   : > { %v1034_v37 = vld [vmem:[#allocation2 + $0x10] sm:$0xff] }
  0xe0   : > { %1555 = vmatprep.mubr.msk.bf16.mxu1 %vm1063_vm0, %v1034_v37 }
  0xe2   : > { %v1035_v38 = vld [vmem:[#allocation2 + $0x18] sm:$0xff] }
  0xe3   : > { %1556 = vmatmul.mubr.msk.bf16.vlgmr.msra.gmra.mrb[0].mxu1 %vm1063_vm0, %v1035_v38 }
 0x192   : > { %v1553_v40 = vpop.f32.mrb[0].mxu0 }
 0x193   : > { %v1123_v41 = vadd.f32 %v1553_v40, %v1509_v39  ;;  %v1114_v42 = vpop.f32.mrb[1].mxu0 }
 0x194   : > { %v1115_v43 = vadd.f32 %v1509_v39, %v1114_v42  ;;  %v1554_v44 = vpop.f32.mrb[2].mxu0 }
 0x195   : > { %v1532_v45 = vpack.c.bf16 %v1123_v41, %v1123_v41  ;;  %v1126_v46 = vadd.f32 %v1554_v44, %v1509_v39  ;;  %v1117_v47 = vpop.f32.mrb[3].mxu0  ;;  %v1210_v51 = vmul.f32 %v1123_v41, %v1123_v41  ;;  %v1190_v59 = vsel %vm1186_vm2, %v1123_v41, 0.0 }
 0x196   : > { %v1530_v48 = vpack.c.bf16 %v1115_v43, %v1115_v43  ;;  %v1208_v49 = vmul.f32 %v1115_v43, %v1115_v43  ;;  %v1118_v50 = vadd.f32 %v1509_v39, %v1117_v47  ;;  %v1187_v53 = vsel %vm1186_vm2, %v1115_v43, 0.0 }
 0x197   : > { %1180 = vst.msk [vmem:[%s2026_s10 + $0x8] sm:$0xf] %vm1177_vm1, %v1532_v45  ;;  %v1533_v52 = vpack.c.bf16 %v1126_v46, %v1126_v46  ;;  %v1211_v61 = vmul.f32 %v1126_v46, %v1126_v46  ;;  %v1219_v55 = vsel %vm1186_vm2, %v1210_v51, 0.0  ;;  %v1192_v2 = vsel %vm1186_vm2, %v1126_v46, 0.0 }
 0x198   : > { %1178 = vst.msk [vmem:[%s2026_s10] sm:$0xf] %vm1177_vm1, %v1530_v48  ;;  %v1531_v54 = vpack.c.bf16 %v1118_v50, %v1118_v50  ;;  %v1188_v56 = vsel %vm1186_vm2, %v1118_v50, 0.0  ;;  %v1209_v57 = vmul.f32 %v1118_v50, %v1118_v50  ;;  %v1216_v60 = vsel %vm1186_vm2, %v1208_v49, 0.0 }
 0x199   : > { %1181 = vst.msk [vmem:[%s2026_s10 + $0xc] sm:$0xf] %vm1177_vm1, %v1533_v52  ;;  %v1189_v58 = vadd.f32 %v1188_v56, %v1187_v53  ;;  %v1221_v5 = vsel %vm1186_vm2, %v1211_v61, 0.0 }
 0x19a   : > { %1179 = vst.msk [vmem:[%s2026_s10 + $0x4] sm:$0xf] %vm1177_vm1, %v1531_v54  ;;  %v1217_v62 = vsel %vm1186_vm2, %v1209_v57, 0.0 }
 0x19b   : > { %v1191_v63 = vadd.f32 %v1190_v59, %v1189_v58  ;;  %v1218_v1 = vadd.f32 %v1217_v62, %v1216_v60 }
 0x19d   : > { %v1220_v3 = vadd.f32 %v1219_v55, %v1218_v1  ;;  %v1193_v4 = vadd.f32 %v1192_v2, %v1191_v63 }
 0x19f   : > { %v1222_v6 = vadd.f32 %v1221_v5, %v1220_v3 }
 0x1b6   : > { %v1557_v7 = vpop.f32.mrb[0].mxu1 }
 0x1b7   : > { %v1139_v8 = vadd.f32 %v1557_v7, %v1509_v39  ;;  %v1130_v0 = vpop.f32.mrb[1].mxu1 }
 0x1b8   : > { %v1131_v9 = vadd.f32 %v1509_v39, %v1130_v0  ;;  %v1558_v10 = vpop.f32.mrb[2].mxu1 }
 0x1b9   : > { %v1536_v11 = vpack.c.bf16 %v1139_v8, %v1139_v8  ;;  %v1142_v12 = vadd.f32 %v1558_v10, %v1509_v39  ;;  %v1133_v13 = vpop.f32.mrb[3].mxu1  ;;  %v1214_v23 = vmul.f32 %v1139_v8, %v1139_v8  ;;  %v1198_v27 = vsel %vm1186_vm2, %v1139_v8, 0.0 }
 0x1ba   : > { %v1534_v14 = vpack.c.bf16 %v1131_v9, %v1131_v9  ;;  %v1194_v15 = vsel %vm1186_vm2, %v1131_v9, 0.0  ;;  %v1212_v16 = vmul.f32 %v1131_v9, %v1131_v9  ;;  %v1134_v17 = vadd.f32 %v1509_v39, %v1133_v13 }
 0x1bb   : > { %1184 = vst.msk [vmem:[%s2026_s10 + $0x18] sm:$0xf] %vm1177_vm1, %v1536_v11  ;;  %v1195_v18 = vadd.f32 %v1194_v15, %v1193_v4  ;;  %v1537_v19 = vpack.c.bf16 %v1142_v12, %v1142_v12  ;;  %v1215_v28 = vmul.f32 %v1142_v12, %v1142_v12  ;;  %v1200_v31 = vsel %vm1186_vm2, %v1142_v12, 0.0 }
 0x1bc   : > { %1182 = vst.msk [vmem:[%s2026_s10 + $0x10] sm:$0xf] %vm1177_vm1, %v1534_v14  ;;  %v1223_v20 = vsel %vm1186_vm2, %v1212_v16, 0.0  ;;  %v1535_v21 = vpack.c.bf16 %v1134_v17, %v1134_v17  ;;  %v1196_v22 = vsel %vm1186_vm2, %v1134_v17, 0.0  ;;  %v1213_v26 = vmul.f32 %v1134_v17, %v1134_v17 }
 0x1bd   : > { %v1224_v24 = vadd.f32 %v1223_v20, %v1222_v6  ;;  %1185 = vst.msk [vmem:[%s2026_s10 + $0x1c] sm:$0xf] %vm1177_vm1, %v1537_v19  ;;  %v1197_v25 = vadd.f32 %v1196_v22, %v1195_v18  ;;  %v1227_v33 = vsel %vm1186_vm2, %v1214_v23, 0.0  ;;  %v1229_v36 = vsel %vm1186_vm2, %v1215_v28, 0.0 }
 0x1be   : > { %1183 = vst.msk [vmem:[%s2026_s10 + $0x14] sm:$0xf] %vm1177_vm1, %v1535_v21  ;;  %v1225_v30 = vsel %vm1186_vm2, %v1213_v26, 0.0 }
 0x1bf   : > { %v1199_v29 = vadd.f32 %v1198_v27, %v1197_v25  ;;  %v1226_v32 = vadd.f32 %v1225_v30, %v1224_v24 }
 0x1c1   : > { %v1201_v34 = vadd.f32 %v1200_v31, %v1199_v29  ;;  %v1228_v35 = vadd.f32 %v1227_v33, %v1226_v32 }
 0x1c3   : > { %v1202_v37 = vrot.slane %v1201_v34, 4  ;;  %v1230_v38 = vadd.f32 %v1229_v36, %v1228_v35 }
 0x1c5   : > { %v1203_v39 = vadd.f32 %v1202_v37, %v1201_v34  ;;  %v1231_v40 = vrot.slane %v1230_v38, 4 }
 0x1c7   : > { %v1204_v41 = vrot.slane %v1203_v39, 2  ;;  %v1232_v42 = vadd.f32 %v1231_v40, %v1230_v38 }
 0x1c9   : > { %v1205_v43 = vadd.f32 %v1204_v41, %v1203_v39  ;;  %v1233_v44 = vrot.slane %v1232_v42, 2  ;;  %1240 = sbr.rel (%p1525_p7) target bundleno = 466 (0x1d2), region = 36 }
 0x1cb   : > { %v1206_v45 = vrot.slane %v1205_v43, 1  ;;  %v1234_v46 = vadd.f32 %v1233_v44, %v1232_v42 }
 0x1cd   : > { %v1207_v47 = vadd.f32 %v1206_v45, %v1205_v43  ;;  %v1235_v48 = vrot.slane %v1234_v46, 1 }
 0x1cf   : > { %v1236_v49 = vadd.f32 %v1235_v48, %v1234_v46  ;;  %1242 = vst.msk [vmem:[%s1744_s27] sm:$0x1] (!%p1525_p7), %vm1241_vm3, %v1207_v47 }
 0x1d1   : > { %1243 = vst.msk [vmem:[%s1744_s27 + $0x1] sm:$0x1] %vm1241_vm3, %v1236_v49 }
 0x1d2 PF: > { %p1526_p8 = scmp.eq.s32.totalorder %s1653_s15, 0 }
 0x1d3   : > { %vm1250_vm4 = vcmask (!%p1526_p8), 57344  }
 0x1d4   : > { %1247 = sbr.rel (%p1526_p8) target bundleno = 476 (0x1dc), region = 40 }
 0x1d8   : > { %v1248_v50 = vld [vmem:[%s1744_s27] sm:$0x1] (!%p1526_p8)  ;;  %v1252_v51 = vld [vmem:[%s1744_s27 + $0x1] sm:$0x1] (!%p1526_p8) }
 0x1d9   : > { %v1249_v52 = vadd.f32 (!%p1526_p8), %v1248_v50, %v1207_v47  ;;  %v1253_v53 = vadd.f32 (!%p1526_p8), %v1252_v51, %v1236_v49 }
 0x1db   : > { %1251 = vst.msk [vmem:[%s1744_s27] sm:$0x1] %vm1250_vm4, %v1249_v52  ;;  %1254 = vst.msk [vmem:[%s1744_s27 + $0x1] sm:$0x1] %vm1250_vm4, %v1253_v53 }
 0x1dc PF: > { %s15_s19 = sadd.s32 1, %s1669_s19   ;;  %s2092_s15 = smov %s1661_s17 }
 0x1dd   : > { %p12_p9 = scmp.ge.s32.totalorder %s15_s19, 10   ;;  %s2093_s16 = smov %s1665_s18 }
 0x1de   : > { %s2094_s17 = smov %s2097_s20  ;;  %s2095_s18 = smov %s2101_s21 }
 0x1df   :  { %14 = sbr.rel (!%p12_p9) target bundleno = 3 (0x3), region = 85 }

</bundles_post_ra>
